<compile_context>
chip_gen: v7x
topology: tpu7x:2x2x1
jax: 0.10.0
libtpu: 0.0.40
codegen_flags: <defaults>
</compile_context>

<pallas_src>
import functools

import jax
import jax.numpy as jnp
from jax.experimental import pallas as pl
from jax.experimental.pallas import tpu as pltpu

BN_EPS = 1e-5
LANE = 128
SUBLANE = 8


def _round_up(v, m):
    return ((v + m - 1) // m) * m


# ------------------------------ Pallas kernel ------------------------------ #

def _gcn_fused_kernel(num_classes,
                      a_ref, x_ref, p_ref, wg_ref, bg_ref,
                      fc1w_ref, fc1b_ref, fc2w_ref, fc2b_ref, o_ref):
    """Fused per-graph-batch body: L x (GCNConv [+folded-BN bias +ReLU]) ->
    mean-pool -> MLP head -> masked log_softmax.  Everything lives in VMEM."""
    a = a_ref[0]                         # (Np, Np)  bf16, normalized adjacency
    x = x_ref[0]                         # (Np, Dp)  bf16, node features
    bg = bg_ref[...]                     # (L, Dp)   f32, folded BN biases
    num_layers = wg_ref.shape[0]

    for layer in range(num_layers):      # static unroll (L is small & static)
        # aggregation-first: (A @ X) @ W  (same cost as A @ (XW) at padded dims)
        agg = jnp.dot(a, x, preferred_element_type=jnp.float32)
        h = jnp.dot(agg.astype(jnp.bfloat16), wg_ref[layer],
                    preferred_element_type=jnp.float32)
        if layer < num_layers - 1:       # hidden layers: folded-BN bias + ReLU
            h = jnp.maximum(h + bg[layer][None, :], 0.0)
        x = h.astype(jnp.bfloat16)       # stays resident on-chip

    # readout: global mean pool == P @ X
    xg = jnp.dot(p_ref[0], x, preferred_element_type=jnp.float32)

    # MLP head
    h1 = jnp.dot(xg.astype(jnp.bfloat16), fc1w_ref[...],
                 preferred_element_type=jnp.float32) + fc1b_ref[...]
    h1 = jnp.maximum(h1, 0.0)
    logits = jnp.dot(h1.astype(jnp.bfloat16), fc2w_ref[...],
                     preferred_element_type=jnp.float32) + fc2b_ref[...]

    # log_softmax over the real class lanes only (padded lanes masked out)
    lane_id = jax.lax.broadcasted_iota(jnp.int32, logits.shape, 1)
    valid = lane_id < num_classes
    z = jnp.where(valid, logits, jnp.float32(-1e30))
    m = jnp.max(z, axis=-1, keepdims=True)
    zz = z - m
    ssum = jnp.sum(jnp.where(valid, jnp.exp(zz), 0.0), axis=-1, keepdims=True)
    o_ref[0] = zz - jnp.log(ssum)


def gcn_forward(prepared, a_pad, p_pad, x_pad, num_graphs, num_classes):
    """a_pad: (B, Np, Np) bf16, x_pad: (B, Np, Dp) bf16, p_pad: (B, Gp, Np) bf16."""
    B, n_pad, _ = a_pad.shape
    d_pad = x_pad.shape[2]
    g_pad = p_pad.shape[1]
    c_pad = prepared["fc2w"].shape[1]
    L = prepared["wg"].shape[0]

    # advisory cost estimate (stops XLA mis-scheduling this small custom call)
    flops_per_batch = (2 * L * (n_pad * n_pad * d_pad + n_pad * d_pad * d_pad)
                       + 2 * g_pad * n_pad * d_pad
                       + 2 * g_pad * d_pad * d_pad
                       + 2 * g_pad * d_pad * c_pad)
    inputs = (a_pad, x_pad, p_pad, prepared["wg"], prepared["bg"],
              prepared["fc1w"], prepared["fc1b"],
              prepared["fc2w"], prepared["fc2b"])
    bytes_accessed = sum(int(t.size) * t.dtype.itemsize for t in inputs) \
        + B * g_pad * c_pad * 4
    cost = pl.CostEstimate(flops=int(B * flops_per_batch),
                           transcendentals=int(B * g_pad * (c_pad + 1)),
                           bytes_accessed=int(bytes_accessed))

    # Per-batch blocks for A / X / P / out; constant-index blocks for weights
    # so they are fetched once and stay VMEM-resident across grid steps.
    out = pl.pallas_call(
        functools.partial(_gcn_fused_kernel, num_classes),
        grid=(B,),
        in_specs=[
            pl.BlockSpec((1, n_pad, n_pad), lambda b: (b, 0, 0)),   # A
            pl.BlockSpec((1, n_pad, d_pad), lambda b: (b, 0, 0)),   # X
            pl.BlockSpec((1, g_pad, n_pad), lambda b: (b, 0, 0)),   # P
            pl.BlockSpec((L, d_pad, d_pad), lambda b: (0, 0, 0)),   # wg (pinned)
            pl.BlockSpec((L, d_pad), lambda b: (0, 0)),             # bg (pinned)
            pl.BlockSpec((d_pad, d_pad), lambda b: (0, 0)),         # fc1w
            pl.BlockSpec((1, d_pad), lambda b: (0, 0)),             # fc1b
            pl.BlockSpec((d_pad, c_pad), lambda b: (0, 0)),         # fc2w
            pl.BlockSpec((1, c_pad), lambda b: (0, 0)),             # fc2b
        ],
        out_specs=pl.BlockSpec((1, g_pad, c_pad), lambda b: (b, 0, 0)),
        out_shape=jax.ShapeDtypeStruct((B, g_pad, c_pad), jnp.float32),
        compiler_params=pltpu.CompilerParams(
            dimension_semantics=("parallel",),        # shards across v7x TCs
            vmem_limit_bytes=32 * 1024 * 1024),       # explicit scoped VMEM
        cost_estimate=cost,
    )(*inputs)
    return out[:, :num_graphs, :num_classes]


# ------------------------ graph / parameter preparation --------------------- #

def build_norm_adjacency(edge_index, num_nodes, n_pad):
    """Dense A_pad with A[col[e], row[e]] += dinv[row]*dinv[col].
    Degree over edge_index[0] (+1); no self-loop edges (matches reference)."""
    row, col = edge_index[0], edge_index[1]
    deg = jnp.zeros((num_nodes,), jnp.float32).at[row].add(1.0) + 1.0
    dinv = deg ** -0.5
    norm = dinv[row] * dinv[col]
    a = jnp.zeros((n_pad, n_pad), jnp.float32).at[col, row].add(norm)
    return a.astype(jnp.bfloat16)


def build_pool_matrix(batch, num_graphs, g_pad, n_pad):
    """P[g, n] = 1/|graph g| for real nodes of graph g; zero on padding."""
    n = batch.shape[0]
    batch_pad = jnp.full((n_pad,), -1, jnp.int32).at[:n].set(batch)
    onehot = (batch_pad[None, :] == jnp.arange(g_pad)[:, None]).astype(jnp.float32)
    counts = jnp.maximum(onehot.sum(axis=1, keepdims=True), 1.0)
    return (onehot / counts).astype(jnp.bfloat16)


def xavier_uniform(key, shape, gain):
    # shape = (fan_in, fan_out): weights stored pre-transposed for x @ W
    fan_in, fan_out = shape
    bound = gain * jnp.sqrt(6.0 / (fan_in + fan_out))
    return jax.random.uniform(key, shape, jnp.float32, -bound, bound)


def init_params(key, feat_size, hidden, num_classes, num_layers):
    gain = jnp.sqrt(2.0)  # nn.init.calculate_gain('relu')
    keys = jax.random.split(key, num_layers + 4)
    params = {"gcn_w": [], "bn": []}
    dims = [feat_size] + [hidden] * num_layers
    for i in range(num_layers):
        params["gcn_w"].append(xavier_uniform(keys[i], (dims[i], dims[i + 1]), gain))
    for _ in range(num_layers - 1):  # one BN per non-final GCN layer
        params["bn"].append(dict(
            gamma=jnp.ones((hidden,), jnp.float32),
            beta=jnp.zeros((hidden,), jnp.float32),
            mean=jnp.zeros((hidden,), jnp.float32),
            var=jnp.ones((hidden,), jnp.float32),
        ))
    params["fc1_w"] = xavier_uniform(keys[num_layers], (hidden, hidden), gain)
    params["fc1_b"] = 0.01 * jax.random.normal(keys[num_layers + 1], (hidden,), jnp.float32)
    params["fc2_w"] = xavier_uniform(keys[num_layers + 2], (hidden, num_classes), gain)
    params["fc2_b"] = 0.01 * jax.random.normal(keys[num_layers + 3], (num_classes,), jnp.float32)
    return params


def _pad2(x, rows, cols):
    return jnp.pad(x, ((0, rows - x.shape[0]), (0, cols - x.shape[1])))


def prepare_params(params, feat_size, hidden, num_classes, num_layers, d_pad, c_pad):
    """Fold eval-mode BN into the GCN weights, pad to lane-dense shapes,
    cast matmul operands to bf16 (accumulation is f32 inside the kernel).
    GCNConv's Linear has bias=False, so no per-layer conv bias to fold."""
    wg, bg = [], []
    for l in range(num_layers):
        w = params["gcn_w"][l]                                  # (in, hidden)
        if l < num_layers - 1:
            bn = params["bn"][l]
            scale = bn["gamma"] * jax.lax.rsqrt(bn["var"] + BN_EPS)  # (H,)
            w = w * scale[None, :]
            b = bn["beta"] - bn["mean"] * scale
        else:
            b = jnp.zeros((hidden,), jnp.float32)               # final: no BN
        wg.append(_pad2(w, d_pad, d_pad))
        bg.append(jnp.pad(b, (0, d_pad - hidden)))
    return dict(
        wg=jnp.stack(wg).astype(jnp.bfloat16),                  # (L, Dp, Dp)
        bg=jnp.stack(bg).astype(jnp.float32),                   # (L, Dp)
        fc1w=_pad2(params["fc1_w"], d_pad, d_pad).astype(jnp.bfloat16),
        fc1b=jnp.pad(params["fc1_b"], (0, d_pad - hidden))[None, :],
        fc2w=_pad2(params["fc2_w"], d_pad, c_pad).astype(jnp.bfloat16),
        fc2b=jnp.pad(params["fc2_b"], (0, c_pad - num_classes))[None, :],
    )


# ----------------------- pure-JAX f32 reference (check) --------------------- #

def reference_forward(params, x, edge_index, batch, num_graphs, num_layers):
    row, col = edge_index[0], edge_index[1]
    n = x.shape[0]
    deg = jnp.zeros((n,), jnp.float32).at[row].add(1.0) + 1.0
    dinv = deg ** -0.5
    norm = dinv[row] * dinv[col]
    h = x
    for l in range(num_layers):
        h = h @ params["gcn_w"][l]
        msg = norm[:, None] * h[row]
        h = jnp.zeros((n, h.shape[1]), jnp.float32).at[col].add(msg)
        if l < num_layers - 1:
            bn = params["bn"][l]
            h = (h - bn["mean"]) * jax.lax.rsqrt(bn["var"] + BN_EPS) \
                * bn["gamma"] + bn["beta"]
            h = jnp.maximum(h, 0.0)
    onehot = (batch[None, :] == jnp.arange(num_graphs)[:, None]).astype(jnp.float32)
    xg = (onehot @ h) / jnp.maximum(onehot.sum(axis=1, keepdims=True), 1.0)
    h1 = jnp.maximum(xg @ params["fc1_w"] + params["fc1_b"], 0.0)
    logits = h1 @ params["fc2_w"] + params["fc2_b"]
    return jax.nn.log_softmax(logits, axis=-1)


# ---------------------------------- main ----------------------------------- #

if __name__ == "__main__":
    feat_size, hidden, num_classes, num_layers = 8, 32, 6, 3
    num_nodes, num_edges, num_graphs = 24, 48, 2
    num_batches = 4                     # graph-batches per pallas_call (grid)

    # lane/sublane-dense padded sizes (128-aligned: native on v5e, fine at
    # these tiny dims on v6e/v7x; revisit 256 alignment only if Np grows)
    n_pad = _round_up(num_nodes, LANE)                  # 128 node rows/cols
    d_pad = _round_up(max(feat_size, hidden), LANE)     # 128 shared feat width
    c_pad = _round_up(num_classes, LANE)                # 128 class lanes
    g_pad = _round_up(num_graphs, SUBLANE)              # 8 graph sublanes

    key = jax.random.PRNGKey(0)
    k_p, k_data = jax.random.split(key)
    params = init_params(k_p, feat_size, hidden, num_classes, num_layers)
    prepared = prepare_params(params, feat_size, hidden, num_classes,
                              num_layers, d_pad, c_pad)

    # build B independent graph-batches (structure built once, off hot path)
    a_list, x_list, p_list, raw = [], [], [], []
    for b in range(num_batches):
        k_x, k_e, k_data = jax.random.split(k_data, 3)
        x = jax.random.normal(k_x, (num_nodes, feat_size), jnp.float32)
        edge_index = jax.random.randint(k_e, (2, num_edges), 0, num_nodes, jnp.int32)
        batch = jnp.concatenate([
            jnp.zeros((num_nodes // 2,), jnp.int32),
            jnp.ones((num_nodes - num_nodes // 2,), jnp.int32),
        ])
        a_list.append(build_norm_adjacency(edge_index, num_nodes, n_pad))
        p_list.append(build_pool_matrix(batch, num_graphs, g_pad, n_pad))
        x_list.append(_pad2(x, n_pad, d_pad).astype(jnp.bfloat16))
        raw.append((x, edge_index, batch))

    a_pad = jnp.stack(a_list)           # (B, Np, Np) bf16
    x_pad = jnp.stack(x_list)           # (B, Np, Dp) bf16
    p_pad = jnp.stack(p_list)           # (B, Gp, Np) bf16

    out = gcn_forward(prepared, a_pad, p_pad, x_pad, num_graphs, num_classes)
    out = jax.block_until_ready(out)

    assert out.shape == (num_batches, num_graphs, num_classes)
    # rows of log_softmax must exponentiate-sum to 1
    assert jnp.allclose(jnp.exp(out).sum(axis=-1), 1.0, atol=1e-3)
    # compare against f32 pure-JAX reference (bf16 MXU operands => loose atol)
    for b in range(num_batches):
        x, edge_index, batch = raw[b]
        ref = reference_forward(params, x, edge_index, batch,
                                num_graphs, num_layers)
        assert jnp.allclose(out[b], ref, atol=0.15), (
            f"batch {b}: max abs err {jnp.max(jnp.abs(out[b] - ref))}")
    print("KERNEL_OK")
</pallas_src>

<mosaic_0001>
module attributes {stable_mosaic.version = 11 : i64} {
  func.func @_gcn_fused_kernel(%arg0: i32, %arg1: memref<1x128x128xbf16, #tpu.memory_space<vmem>>, %arg2: memref<1x128x128xbf16, #tpu.memory_space<vmem>>, %arg3: memref<1x8x128xbf16, #tpu.memory_space<vmem>>, %arg4: memref<3x128x128xbf16, #tpu.memory_space<vmem>>, %arg5: memref<3x128xf32, #tpu.memory_space<vmem>>, %arg6: memref<128x128xbf16, #tpu.memory_space<vmem>>, %arg7: memref<1x128xf32, #tpu.memory_space<vmem>>, %arg8: memref<128x128xbf16, #tpu.memory_space<vmem>>, %arg9: memref<1x128xf32, #tpu.memory_space<vmem>>, %arg10: memref<1x8x128xf32, #tpu.memory_space<vmem>>) attributes {dimension_semantics = [#tpu.dimension_semantics<parallel>], iteration_bounds = array<i64: 4>, scalar_prefetch = 0 : i64, scratch_operands = 0 : i64, tpu.core_type = #tpu.core_type<tc>, window_params = [{transform_indices = @transform_0, window_bounds = array<i64: 1, 128, 128>}, {transform_indices = @transform_1, window_bounds = array<i64: 1, 128, 128>}, {transform_indices = @transform_2, window_bounds = array<i64: 1, 8, 128>}, {pipeline_mode = #tpu.pipeline_mode<synchronous>, transform_indices = @transform_3, window_bounds = array<i64: 3, 128, 128>}, {pipeline_mode = #tpu.pipeline_mode<synchronous>, transform_indices = @transform_4, window_bounds = array<i64: 3, 128>}, {pipeline_mode = #tpu.pipeline_mode<synchronous>, transform_indices = @transform_5, window_bounds = array<i64: 128, 128>}, {pipeline_mode = #tpu.pipeline_mode<synchronous>, transform_indices = @transform_6, window_bounds = array<i64: 1, 128>}, {pipeline_mode = #tpu.pipeline_mode<synchronous>, transform_indices = @transform_7, window_bounds = array<i64: 128, 128>}, {pipeline_mode = #tpu.pipeline_mode<synchronous>, transform_indices = @transform_8, window_bounds = array<i64: 1, 128>}, {transform_indices = @transform_9, window_bounds = array<i64: 1, 8, 128>}]} {
    %c0 = arith.constant 0 : index
    %c0_0 = arith.constant 0 : index
    %c0_1 = arith.constant 0 : index
    %0 = vector.load %arg1[%c0, %c0_0, %c0_1] : memref<1x128x128xbf16, #tpu.memory_space<vmem>>, vector<1x128x128xbf16>
    %1 = vector.shape_cast %0 : vector<1x128x128xbf16> to vector<128x128xbf16>
    %c0_2 = arith.constant 0 : index
    %c0_3 = arith.constant 0 : index
    %c0_4 = arith.constant 0 : index
    %2 = vector.load %arg2[%c0_2, %c0_3, %c0_4] : memref<1x128x128xbf16, #tpu.memory_space<vmem>>, vector<1x128x128xbf16>
    %3 = vector.shape_cast %2 : vector<1x128x128xbf16> to vector<128x128xbf16>
    %c0_5 = arith.constant 0 : index
    %c0_6 = arith.constant 0 : index
    %4 = vector.load %arg5[%c0_5, %c0_6] : memref<3x128xf32, #tpu.memory_space<vmem>>, vector<3x128xf32>
    %cst = arith.constant dense<0.000000e+00> : vector<128x128xf32>
    %5 = tpu.matmul %1, %3, %cst {dimension_numbers = #tpu.dot_dimension_numbers<[1], [0], [0], [1], [0, 0, 1, 1], [], []>} : vector<128x128xbf16>, vector<128x128xbf16>, vector<128x128xf32> -> vector<128x128xf32>
    %6 = arith.truncf %5 : vector<128x128xf32> to vector<128x128xbf16>
    %c0_7 = arith.constant 0 : index
    %c0_8 = arith.constant 0 : index
    %c0_9 = arith.constant 0 : index
    %7 = vector.load %arg4[%c0_7, %c0_8, %c0_9] : memref<3x128x128xbf16, #tpu.memory_space<vmem>>, vector<1x128x128xbf16>
    %8 = vector.shape_cast %7 : vector<1x128x128xbf16> to vector<128x128xbf16>
    %cst_10 = arith.constant dense<0.000000e+00> : vector<128x128xf32>
    %9 = tpu.matmul %6, %8, %cst_10 {dimension_numbers = #tpu.dot_dimension_numbers<[1], [0], [0], [1], [0, 0, 1, 1], [], []>} : vector<128x128xbf16>, vector<128x128xbf16>, vector<128x128xf32> -> vector<128x128xf32>
    %10 = vector.extract_strided_slice %4 {offsets = [0, 0], sizes = [1, 128], strides = [1, 1]} : vector<3x128xf32> to vector<1x128xf32>
    %11 = vector.shape_cast %10 : vector<1x128xf32> to vector<128xf32>
    %12 = vector.shape_cast %11 : vector<128xf32> to vector<1x128xf32>
    %13 = vector.broadcast %12 : vector<1x128xf32> to vector<128x128xf32>
    %14 = arith.addf %9, %13 : vector<128x128xf32>
    %cst_11 = arith.constant 0.000000e+00 : f32
    %15 = vector.broadcast %cst_11 : f32 to vector<128x128xf32>
    %16 = arith.maximumf %14, %15 : vector<128x128xf32>
    %17 = arith.truncf %16 : vector<128x128xf32> to vector<128x128xbf16>
    %cst_12 = arith.constant dense<0.000000e+00> : vector<128x128xf32>
    %18 = tpu.matmul %1, %17, %cst_12 {dimension_numbers = #tpu.dot_dimension_numbers<[1], [0], [0], [1], [0, 0, 1, 1], [], []>} : vector<128x128xbf16>, vector<128x128xbf16>, vector<128x128xf32> -> vector<128x128xf32>
    %19 = arith.truncf %18 : vector<128x128xf32> to vector<128x128xbf16>
    %c1 = arith.constant 1 : index
    %c0_13 = arith.constant 0 : index
    %c0_14 = arith.constant 0 : index
    %20 = vector.load %arg4[%c1, %c0_13, %c0_14] : memref<3x128x128xbf16, #tpu.memory_space<vmem>>, vector<1x128x128xbf16>
    %21 = vector.shape_cast %20 : vector<1x128x128xbf16> to vector<128x128xbf16>
    %cst_15 = arith.constant dense<0.000000e+00> : vector<128x128xf32>
    %22 = tpu.matmul %19, %21, %cst_15 {dimension_numbers = #tpu.dot_dimension_numbers<[1], [0], [0], [1], [0, 0, 1, 1], [], []>} : vector<128x128xbf16>, vector<128x128xbf16>, vector<128x128xf32> -> vector<128x128xf32>
    %23 = vector.extract_strided_slice %4 {offsets = [1, 0], sizes = [1, 128], strides = [1, 1]} : vector<3x128xf32> to vector<1x128xf32>
    %24 = vector.shape_cast %23 : vector<1x128xf32> to vector<128xf32>
    %25 = vector.shape_cast %24 : vector<128xf32> to vector<1x128xf32>
    %26 = vector.broadcast %25 : vector<1x128xf32> to vector<128x128xf32>
    %27 = arith.addf %22, %26 : vector<128x128xf32>
    %cst_16 = arith.constant 0.000000e+00 : f32
    %28 = vector.broadcast %cst_16 : f32 to vector<128x128xf32>
    %29 = arith.maximumf %27, %28 : vector<128x128xf32>
    %30 = arith.truncf %29 : vector<128x128xf32> to vector<128x128xbf16>
    %cst_17 = arith.constant dense<0.000000e+00> : vector<128x128xf32>
    %31 = tpu.matmul %1, %30, %cst_17 {dimension_numbers = #tpu.dot_dimension_numbers<[1], [0], [0], [1], [0, 0, 1, 1], [], []>} : vector<128x128xbf16>, vector<128x128xbf16>, vector<128x128xf32> -> vector<128x128xf32>
    %32 = arith.truncf %31 : vector<128x128xf32> to vector<128x128xbf16>
    %c2 = arith.constant 2 : index
    %c0_18 = arith.constant 0 : index
    %c0_19 = arith.constant 0 : index
    %33 = vector.load %arg4[%c2, %c0_18, %c0_19] : memref<3x128x128xbf16, #tpu.memory_space<vmem>>, vector<1x128x128xbf16>
    %34 = vector.shape_cast %33 : vector<1x128x128xbf16> to vector<128x128xbf16>
    %cst_20 = arith.constant dense<0.000000e+00> : vector<128x128xf32>
    %35 = tpu.matmul %32, %34, %cst_20 {dimension_numbers = #tpu.dot_dimension_numbers<[1], [0], [0], [1], [0, 0, 1, 1], [], []>} : vector<128x128xbf16>, vector<128x128xbf16>, vector<128x128xf32> -> vector<128x128xf32>
    %36 = arith.truncf %35 : vector<128x128xf32> to vector<128x128xbf16>
    %c0_21 = arith.constant 0 : index
    %c0_22 = arith.constant 0 : index
    %c0_23 = arith.constant 0 : index
    %37 = vector.load %arg3[%c0_21, %c0_22, %c0_23] : memref<1x8x128xbf16, #tpu.memory_space<vmem>>, vector<1x8x128xbf16>
    %38 = vector.shape_cast %37 : vector<1x8x128xbf16> to vector<8x128xbf16>
    %cst_24 = arith.constant dense<0.000000e+00> : vector<8x128xf32>
    %39 = tpu.matmul %38, %36, %cst_24 {dimension_numbers = #tpu.dot_dimension_numbers<[1], [0], [0], [1], [0, 0, 1, 1], [], []>} : vector<8x128xbf16>, vector<128x128xbf16>, vector<8x128xf32> -> vector<8x128xf32>
    %40 = arith.truncf %39 : vector<8x128xf32> to vector<8x128xbf16>
    %c0_25 = arith.constant 0 : index
    %c0_26 = arith.constant 0 : index
    %41 = vector.load %arg6[%c0_25, %c0_26] : memref<128x128xbf16, #tpu.memory_space<vmem>>, vector<128x128xbf16>
    %cst_27 = arith.constant dense<0.000000e+00> : vector<8x128xf32>
    %42 = tpu.matmul %40, %41, %cst_27 {dimension_numbers = #tpu.dot_dimension_numbers<[1], [0], [0], [1], [0, 0, 1, 1], [], []>} : vector<8x128xbf16>, vector<128x128xbf16>, vector<8x128xf32> -> vector<8x128xf32>
    %c0_28 = arith.constant 0 : index
    %c0_29 = arith.constant 0 : index
    %43 = vector.load %arg7[%c0_28, %c0_29] : memref<1x128xf32, #tpu.memory_space<vmem>>, vector<1x128xf32>
    %44 = vector.broadcast %43 : vector<1x128xf32> to vector<8x128xf32>
    %45 = arith.addf %42, %44 : vector<8x128xf32>
    %cst_30 = arith.constant 0.000000e+00 : f32
    %46 = vector.broadcast %cst_30 : f32 to vector<8x128xf32>
    %47 = arith.maximumf %45, %46 : vector<8x128xf32>
    %48 = arith.truncf %47 : vector<8x128xf32> to vector<8x128xbf16>
    %c0_31 = arith.constant 0 : index
    %c0_32 = arith.constant 0 : index
    %49 = vector.load %arg8[%c0_31, %c0_32] : memref<128x128xbf16, #tpu.memory_space<vmem>>, vector<128x128xbf16>
    %cst_33 = arith.constant dense<0.000000e+00> : vector<8x128xf32>
    %50 = tpu.matmul %48, %49, %cst_33 {dimension_numbers = #tpu.dot_dimension_numbers<[1], [0], [0], [1], [0, 0, 1, 1], [], []>} : vector<8x128xbf16>, vector<128x128xbf16>, vector<8x128xf32> -> vector<8x128xf32>
    %c0_34 = arith.constant 0 : index
    %c0_35 = arith.constant 0 : index
    %51 = vector.load %arg9[%c0_34, %c0_35] : memref<1x128xf32, #tpu.memory_space<vmem>>, vector<1x128xf32>
    %52 = vector.broadcast %51 : vector<1x128xf32> to vector<8x128xf32>
    %53 = arith.addf %50, %52 : vector<8x128xf32>
    %54 = tpu.iota {dimensions = array<i32: 1>} : vector<8x128xi32>
    %c6_i32 = arith.constant 6 : i32
    %55 = vector.broadcast %c6_i32 : i32 to vector<8x128xi32>
    %56 = arith.cmpi slt, %54, %55 : vector<8x128xi32>
    %cst_36 = arith.constant -1.000000e+30 : f32
    %57 = vector.broadcast %cst_36 : f32 to vector<8x128xf32>
    %58 = arith.select %56, %53, %57 : vector<8x128xi1>, vector<8x128xf32>
    %cst_37 = arith.constant dense<0xFF800000> : vector<8xf32>
    %59 = vector.multi_reduction <maximumf>, %58, %cst_37 [1] : vector<8x128xf32> to vector<8xf32>
    %60 = vector.shape_cast %59 : vector<8xf32> to vector<8x1xf32>
    %61 = vector.broadcast %60 : vector<8x1xf32> to vector<8x128xf32>
    %62 = arith.subf %58, %61 : vector<8x128xf32>
    %63 = math.exp %62 : vector<8x128xf32>
    %cst_38 = arith.constant 0.000000e+00 : f32
    %64 = vector.broadcast %cst_38 : f32 to vector<8x128xf32>
    %65 = arith.select %56, %63, %64 : vector<8x128xi1>, vector<8x128xf32>
    %cst_39 = arith.constant dense<0.000000e+00> : vector<8xf32>
    %66 = vector.multi_reduction <add>, %65, %cst_39 [1] : vector<8x128xf32> to vector<8xf32>
    %67 = vector.shape_cast %66 : vector<8xf32> to vector<8x1xf32>
    %68 = math.log %67 : vector<8x1xf32>
    %69 = vector.broadcast %68 : vector<8x1xf32> to vector<8x128xf32>
    %70 = arith.subf %62, %69 : vector<8x128xf32>
    %c0_40 = arith.constant 0 : index
    %c0_41 = arith.constant 0 : index
    %c0_42 = arith.constant 0 : index
    %71 = vector.load %arg10[%c0_40, %c0_41, %c0_42] : memref<1x8x128xf32, #tpu.memory_space<vmem>>, vector<1x8x128xf32>
    %72 = vector.shape_cast %71 : vector<1x8x128xf32> to vector<8x128xf32>
    %73 = vector.shape_cast %70 : vector<8x128xf32> to vector<1x8x128xf32>
    tpu.vector_store %arg10[%c0_40, %c0_41, %c0_42], %73 {strides = array<i32>} : memref<1x8x128xf32, #tpu.memory_space<vmem>>, vector<1x8x128xf32>,
    return
  }
  func.func @transform_0(%arg0: i32) -> (i32, i32, i32) {
    %c0_i32 = arith.constant 0 : i32
    %c0_i32_0 = arith.constant 0 : i32
    %c0_i32_1 = arith.constant 0 : i32
    return %arg0, %c0_i32, %c0_i32_0 : i32, i32, i32
  }
  func.func @transform_1(%arg0: i32) -> (i32, i32, i32) {
    %c0_i32 = arith.constant 0 : i32
    %c0_i32_0 = arith.constant 0 : i32
    %c0_i32_1 = arith.constant 0 : i32
    return %arg0, %c0_i32, %c0_i32_0 : i32, i32, i32
  }
  func.func @transform_2(%arg0: i32) -> (i32, i32, i32) {
    %c0_i32 = arith.constant 0 : i32
    %c0_i32_0 = arith.constant 0 : i32
    %c0_i32_1 = arith.constant 0 : i32
    return %arg0, %c0_i32, %c0_i32_0 : i32, i32, i32
  }
  func.func @transform_3(%arg0: i32) -> (i32, i32, i32) {
    %c0_i32 = arith.constant 0 : i32
    %c0_i32_0 = arith.constant 0 : i32
    %c0_i32_1 = arith.constant 0 : i32
    %c0_i32_2 = arith.constant 0 : i32
    return %c0_i32, %c0_i32_0, %c0_i32_1 : i32, i32, i32
  }
  func.func @transform_4(%arg0: i32) -> (i32, i32) {
    %c0_i32 = arith.constant 0 : i32
    %c0_i32_0 = arith.constant 0 : i32
    %c0_i32_1 = arith.constant 0 : i32
    return %c0_i32, %c0_i32_0 : i32, i32
  }
  func.func @transform_5(%arg0: i32) -> (i32, i32) {
    %c0_i32 = arith.constant 0 : i32
    %c0_i32_0 = arith.constant 0 : i32
    %c0_i32_1 = arith.constant 0 : i32
    return %c0_i32, %c0_i32_0 : i32, i32
  }
  func.func @transform_6(%arg0: i32) -> (i32, i32) {
    %c0_i32 = arith.constant 0 : i32
    %c0_i32_0 = arith.constant 0 : i32
    %c0_i32_1 = arith.constant 0 : i32
    return %c0_i32, %c0_i32_0 : i32, i32
  }
  func.func @transform_7(%arg0: i32) -> (i32, i32) {
    %c0_i32 = arith.constant 0 : i32
    %c0_i32_0 = arith.constant 0 : i32
    %c0_i32_1 = arith.constant 0 : i32
    return %c0_i32, %c0_i32_0 : i32, i32
  }
  func.func @transform_8(%arg0: i32) -> (i32, i32) {
    %c0_i32 = arith.constant 0 : i32
    %c0_i32_0 = arith.constant 0 : i32
    %c0_i32_1 = arith.constant 0 : i32
    return %c0_i32, %c0_i32_0 : i32, i32
  }
  func.func @transform_9(%arg0: i32) -> (i32, i32, i32) {
    %c0_i32 = arith.constant 0 : i32
    %c0_i32_0 = arith.constant 0 : i32
    %c0_i32_1 = arith.constant 0 : i32
    return %arg0, %c0_i32, %c0_i32_0 : i32, i32, i32
  }
}

</mosaic_0001>

<bundles_post_ra>
// kernel: tpu_custom_call.1
= control target key start
LH: loop header
LB: loop body
LE: loop exit
PB: predicated region body
PF: predicated region fallthrough
CT: control target
= control target key end

     0   :  { %s3271_s0 = inlined_call_operand.hbm [shape: bf16[4,128,128], index: 0, kind: input, shape index: {}]   ;;  %s3272_s1 = inlined_call_operand.hbm [shape: bf16[4,128,128], index: 1, kind: input, shape index: {}]   ;;  %s3273_s2 = inlined_call_operand.hbm [shape: bf16[4,8,128], index: 2, kind: input, shape index: {}]   ;;  %s3274_s3 = inlined_call_operand.hbm [shape: bf16[3,128,128], index: 3, kind: input, shape index: {}]   ;;  %s3275_s4 = inlined_call_operand.vmem [shape: f32[3,128], index: 4, kind: input, shape index: {}]   ;;  %s3276_s5 = inlined_call_operand.hbm [shape: bf16[128,128], index: 5, kind: input, shape index: {}]   ;;  %s3277_s6 = inlined_call_operand.vmem [shape: f32[1,128], index: 6, kind: input, shape index: {}]   ;;  %s3278_s7 = inlined_call_operand.hbm [shape: bf16[128,128], index: 7, kind: input, shape index: {}]   ;;  %s3279_s8 = inlined_call_operand.vmem [shape: f32[1,128], index: 8, kind: input, shape index: {}]   ;;  %s3280_s9 = inlined_call_operand.hbm [shape: f32[4,8,128], index: 9, kind: output, shape index: {}]  }
   0x1   :  { %3304 = sst [smem:[#allocation25_spill]] %s3272_s1 }
   0x2   :  { %3305 = sst [smem:[#allocation26_spill]] %s3274_s3 }
   0x3   :  { %3306 = sst [smem:[#allocation27_spill]] %s3277_s6 }
   0x4   :  { %3307 = sst [smem:[#allocation28_spill]] %s3279_s8 }
   0x5   :  { %3308 = sst [smem:[#allocation29_spill]] %s3280_s9 }
   0x6   :  { %14 = vsyncpa [#allocation3], 0 }
   0x7   :  { %16 = vsyncpa [#allocation3 + $0x1], 0 }
   0x8   :  { %17 = vsyncpa [#allocation6], 0 }
   0x9   :  { %19 = vsyncpa [#allocation6 + $0x1], 0 }
   0xa   :  { %20 = vsyncpa [#allocation9], 0 }
   0xb   :  { %21 = vsyncpa [#allocation12], 0 }
   0xc   :  { %22 = vsyncpa [#allocation4], 0 }
   0xd   :  { %24 = vsyncpa [#allocation4 + $0x1], 0  ;;  %s2828_s30 = smov 0   ;;  %s2830_s10 = smov 0  }
   0xe   :  { %s2832_s11 = smov 0   ;;  %s2834_s12 = smov 0  }
   0xf LB: > { %3309 = sst [smem:[#allocation19_spill]] %s2753_s30  ;;  %s2849_s13 = sadd.s32 4294967295, %s2765_s12   ;;  %s2765_s12 = sphi %s2834_s12, %s3351_s12   ;;  %s2761_s11 = sphi %s2832_s11, %s3356_s11   ;;  %s2757_s10 = sphi %s2830_s10, %s3355_s10   ;;  %s2753_s30 = sphi %s2828_s30, %s3354_s30  }
  0x10   : > { %3310 = sst [smem:[#allocation20_spill]] %s2761_s11  ;;  %s1901_s14 = sadd.s32 4294967294, %s2765_s12  }
  0x11   : > { %s2853_s15 = sadd.s32 1, %s2765_s12   ;;  %s37_s16 = sadd.s32 1, %s2761_s11 }
  0x12   : > { %3311 = sst [smem:[#allocation21_spill]] %s2853_s15  ;;  %s34_s17 = ssub.s32 %s2765_s12, %s2853_s15 }
  0x13   : > { %p44_p0 = scmp.ne.s32.totalorder %s2761_s11, %s2757_s10  ;;  %p35_p1 = scmp.eq.s32.totalorder %s34_s17, 0 }
  0x14   : > { %p45_p2 = scmp.eq.s32.totalorder %s2765_s12, 0  ;;  %p50_p3 = scmp.ne.s32.totalorder %s2757_s10, %s2753_s30 }
  0x15   : > { %p3284_p4 = scmp.eq.s32.totalorder %s2849_s13, 0  ;;  %p252_p7 = scmp.eq.s32.totalorder %s2849_s13, 3 }
  0x16   : > { %s2865_s18 = scalar_select %p35_p1, %s2761_s11, %s37_s16  }
  0x17   : > { %p2867_p5 = por %p45_p2, %p44_p0  ;;  %p2873_p6 = por %p3284_p4, %p50_p3 }
  0x18   : > { %3312 = sst [smem:[#allocation22_spill]] %s2865_s18  ;;  %p258_p8 = scmp.eq.s32.totalorder %s1901_s14, 3 }
  0x19   : > { %s3313_s19 = scalar_select %p2867_p5, 1, 0 }
  0x1a   : > { %s3314_s20 = scalar_select %p2873_p6, 1, 0 }
  0x1b   : > { %p1902_p9 = scmp.ge.s32.totalorder %s2765_s12, 1  ;;  %p265_p10 = scmp.lt.s32.totalorder %s2765_s12, 5 }
  0x1c   : > { %p2880_p11 = por %p252_p7, %p44_p0  ;;  %p2884_p12 = por %p258_p8, %p50_p3 }
  0x1d   : > { %p2888_p13 = pnand %p1902_p9, %p265_p10  ;;  %s2767_s24 = smov [#allocation8]  }
  0x1e   : > { %s3315_s21 = scalar_select %p2880_p11, 1, 0 }
  0x1f   : > { %s3317_s22 = scalar_select %p2884_p12, 1, 0 }
  0x20   : > { %3316 = sst [smem:[#allocation23_spill]] %s3315_s21  ;;  %p2382_p1 = pneg %p2888_p13 }
  0x21   : > { %3318 = sst [smem:[#allocation24_spill]] %s3317_s22  ;;  %s277_s25 = sshll.u32 %s2767_s24, 4  ;;  %s278_s25 = int_to_ptr.vmem [resolvable:$true] %s277_s25 }
  0x22   : > { %s3319_s23 = scalar_select %p2888_p13, 1, 0 }
  0x23   : > { %p2896_p2 = pnand %p2382_p1, %p3284_p4  ;;  %s2902_s27 = sand.u32 1, %s2761_s11  }
  0x24   : > { %s3321_s3 = sld [smem:[#allocation26_spill]] }
  0x25   : > { %s3320_s26 = scalar_select %p2896_p2, 1, 0 }
  0x26   : > { %p2913_p7 = pneg %p2896_p2 }
  0x28   : > { %s3322_s24 = scalar_select %p2913_p7, 1, 0 }
  0x2a   : > { %s2513_s16 = scalar_lea.hbm %s3321_s3, 3072 }
  0x2b   : > { %p2514_p3 = scmp.ne.s32.totalorder %s3321_s3, %s2513_s16  ;;  %p2520_p10 = scmp.lt.u32.totalorder %s2513_s16, %s3321_s3 }
  0x2d   : > { %p2516_p8 = pnand %p2913_p7, %p2514_p3 }
  0x2f   : > { %p2517_p9 = pneg %p2516_p8 }
  0x31   : > { %p2522_p1 = pnand %p2520_p10, %p2517_p9 }
  0x33   : > { %2525 = shalt.err (!%p2522_p1)
}
  0x34   : > { %s2526_s29 = scalar_lea.vmem %s278_s25, 3072  ;;  %p2534_p11 = scmp.lt.s32.totalorder %s278_s25, %s278_s25 }
  0x35   : > { %p2527_p4 = scmp.ne.s32.totalorder %s278_s25, %s2526_s29  ;;  %p2535_p6 = scmp.lt.s32.totalorder %s2526_s29, %s2526_s29 }
  0x37   : > { %p2529_p0 = pnand %p2527_p4, %p2913_p7  ;;  %p2536_p13 = por %p2535_p6, %p2534_p11 }
  0x39   : > { %p2530_p12 = pneg %p2529_p0 }
  0x3b   : > { %p2537_p5 = pnand %p2536_p13, %p2530_p12 }
  0x3d   : > { %2540 = shalt.err (!%p2537_p5)
}
  0x3e   : > { %s3291_s18 = smov 64   ;;  %s2769_s11 = smov 4  }
  0x3f   : > { %2385 = dma.hbm_to_vmem [thread:$0]  (!%p2896_p2), %s3321_s3, 3072, %s278_s25, [#allocation9], %s3291_s18, %s3291_s18, %s2769_s11  }
  0x40   : > { %s3293_s16 = sshll.u32 %s2765_s12, 10  ;;  %p3323_p4 = scmp.ne.s32.totalorder %s3313_s19, 0 }
  0x41   : > { %p3324_p5 = scmp.lt.s32.totalorder %s2765_s12, 4  ;;  %s347_s29 = sand.u32 1, %s2765_s12  }
  0x42   : > { %s3326_s1 = sld [smem:[#allocation25_spill]]  ;;  %s3327_s9 = sshll.u32 %s2902_s27, 6 }
  0x43   : > { %p2937_p6 = pnand %p3324_p5, %p3323_p4  ;;  %s351_s25 = scalar_lea.vmem [#allocation5], %s3327_s9 }
  0x44   : > { %s358_s19 = sshll.u32 %s351_s25, 4  ;;  %s2953_s15 = scalar_lea.sflag [#allocation6], %s347_s29  ;;  %s2951_s19 = int_to_ptr.vmem [resolvable:$true] %s358_s19 }
  0x45   : > { %s3325_s17 = scalar_select %p2937_p6, 1, 0 }
  0x46   : > { %p2959_p12 = pneg %p2937_p6 }
  0x48   : > { %s2947_s30 = scalar_lea.hbm %s3326_s1, %s3293_s16  ;;  %s2546_s9 = scalar_lea.hbm %s3326_s1, 4096 }
  0x49   : > { %s2541_s14 = scalar_lea.hbm %s2947_s30, 1024  ;;  %p2547_p3 = scmp.lt.u32.totalorder %s2947_s30, %s3326_s1 }
  0x4a   : > { %p2542_p11 = scmp.ne.s32.totalorder %s2947_s30, %s2541_s14  ;;  %p2548_p8 = scmp.lt.u32.totalorder %s2546_s9, %s2541_s14 }
  0x4b   : > { %s3328_s18 = scalar_select %p2959_p12, 1, 0 }
  0x4c   : > { %p2544_p13 = pnand %p2959_p12, %p2542_p11  ;;  %p2549_p9 = por %p2548_p8, %p2547_p3 }
  0x4d   : > { %p2550_p10 = scmp.lt.u32.totalorder %s2541_s14, %s2947_s30 }
  0x4e   : > { %p2545_p0 = pneg %p2544_p13 }
  0x4f   : > { %p2551_p1 = por %p2550_p10, %p2549_p9 }
  0x51   : > { %p2552_p4 = pnand %p2551_p1, %p2545_p0 }
  0x53   : > { %2555 = shalt.err (!%p2552_p4)
}
  0x54   : > { %s2556_s29 = scalar_lea.vmem %s2951_s19, 1024  ;;  %s2770_s22 = smov [#allocation5]  }
  0x55   : > { %p2557_p5 = scmp.ne.s32.totalorder %s2951_s19, %s2556_s29  ;;  %s2561_s28 = sshll.u32 %s2770_s22, 4  ;;  %s2562_s28 = int_to_ptr.vmem [resolvable:$false] %s2561_s28 }
  0x56   : > { %s2563_s16 = scalar_lea.vmem %s2562_s28, 2048  ;;  %p2564_p2 = scmp.lt.s32.totalorder %s2951_s19, %s2562_s28 }
  0x57   : > { %p2559_p11 = pnand %p2557_p5, %p2959_p12  ;;  %p2565_p7 = scmp.lt.s32.totalorder %s2563_s16, %s2556_s29 }
  0x59   : > { %p2560_p13 = pneg %p2559_p11  ;;  %p2566_p3 = por %p2565_p7, %p2564_p2 }
  0x5b   : > { %p2567_p8 = pnand %p2566_p3, %p2560_p13 }
  0x5d   : > { %2570 = shalt.err (!%p2567_p8)
}
  0x5e   : > { %s3329_s14 = smov 64   ;;  %s2771_s9 = smov [#allocation10]  }
  0x5f   : > { %2398 = dma.hbm_to_vmem [thread:$0]  (!%p2937_p6), %s2947_s30, 1024, %s2951_s19, %s2953_s15, %s3329_s14, %s3329_s14, %s2769_s11  }
  0x60   : > { %s293_s25 = sshll.u32 %s2771_s9, 4  ;;  %s2772_s22 = smov [#allocation11]   ;;  %s294_s25 = int_to_ptr.vmem [resolvable:$true] %s293_s25 }
  0x61   : > { %s309_s1 = sshll.u32 %s2772_s22, 4  ;;  %s2571_s16 = scalar_lea.hbm %s3276_s5, 1024  ;;  %s310_s1 = int_to_ptr.vmem [resolvable:$true] %s309_s1 }
  0x62   : > { %p2572_p2 = scmp.ne.s32.totalorder %s3276_s5, %s2571_s16  ;;  %p3330_p7 = scmp.ne.s32.totalorder %s3322_s24, 0 }
  0x63   : > { %p2578_p10 = scmp.lt.u32.totalorder %s2571_s16, %s3276_s5 }
  0x64   : > { %p2574_p0 = pnand %p2572_p2, %p3330_p7 }
  0x66   : > { %p2575_p9 = pneg %p2574_p0 }
  0x68   : > { %p2580_p1 = pnand %p2578_p10, %p2575_p9 }
  0x6a   : > { %2583 = shalt.err (!%p2580_p1)
}
  0x6b   : > { %s2584_s30 = scalar_lea.vmem %s294_s25, 1024  ;;  %p2592_p13 = scmp.lt.s32.totalorder %s294_s25, %s294_s25 }
  0x6c   : > { %p2585_p4 = scmp.ne.s32.totalorder %s294_s25, %s2584_s30  ;;  %p2593_p3 = scmp.lt.s32.totalorder %s2584_s30, %s2584_s30 }
  0x6e   : > { %p2587_p5 = pnand %p2585_p4, %p3330_p7  ;;  %p2594_p8 = por %p2593_p3, %p2592_p13 }
  0x70   : > { %p2588_p11 = pneg %p2587_p5 }
  0x72   : > { %p2595_p6 = pnand %p2594_p8, %p2588_p11 }
  0x74   : > { %2598 = shalt.err (!%p2595_p6)
}
  0x75   : > { %p3331_p2 = scmp.ne.s32.totalorder %s3320_s26, 0  ;;  %s2599_s19 = scalar_lea.hbm %s3278_s7, 1024 }
  0x76   : > { %p2600_p0 = scmp.ne.s32.totalorder %s3278_s7, %s2599_s19  ;;  %p2606_p10 = scmp.lt.u32.totalorder %s2599_s19, %s3278_s7 }
  0x77   : > { %2388 = dma.hbm_to_vmem [thread:$0]  (!%p3331_p2), %s3276_s5, 1024, %s294_s25, [#allocation9], %s3329_s14, %s3329_s14, %s2769_s11  }
  0x78   : > { %p2602_p6 = pnand %p2600_p0, %p3330_p7 }
  0x7a   : > { %p2603_p9 = pneg %p2602_p6 }
  0x7c   : > { %p2608_p1 = pnand %p2606_p10, %p2603_p9 }
  0x7e   : > { %2611 = shalt.err (!%p2608_p1)
}
  0x7f   : > { %s2612_s16 = scalar_lea.vmem %s310_s1, 1024  ;;  %p2620_p13 = scmp.lt.s32.totalorder %s310_s1, %s310_s1 }
  0x80   : > { %p2613_p4 = scmp.ne.s32.totalorder %s310_s1, %s2612_s16  ;;  %p2621_p3 = scmp.lt.s32.totalorder %s2612_s16, %s2612_s16 }
  0x82   : > { %p2615_p5 = pnand %p2613_p4, %p3330_p7  ;;  %p2622_p8 = por %p2621_p3, %p2620_p13 }
  0x84   : > { %p2616_p11 = pneg %p2615_p5 }
  0x86   : > { %p2623_p12 = pnand %p2622_p8, %p2616_p11 }
  0x88   : > { %2626 = shalt.err (!%p2623_p12)
}
  0x89   : > { %2391 = dma.hbm_to_vmem [thread:$0]  (!%p3331_p2), %s3278_s7, 1024, %s310_s1, [#allocation12], %s3329_s14, %s3329_s14, %s2769_s11  }
  0x8a   : > { %s3332_s24 = sshll.u32 %s2765_s12, 10  ;;  %s3333_s21 = sshll.u32 %s2902_s27, 6 }
  0x8b   : > { %s3033_s8 = scalar_lea.hbm %s3271_s0, %s3332_s24  ;;  %s330_s26 = scalar_lea.vmem [#allocation2], %s3333_s21 }
  0x8c   : > { %s337_s19 = sshll.u32 %s330_s26, 4  ;;  %s1913_s9 = sshll.u32 %s2902_s27, 2  ;;  %s3038_s19 = int_to_ptr.vmem [resolvable:$true] %s337_s19 }
  0x8d   : > { %s327_s22 = scalar_lea.sflag [#allocation3], %s2902_s27  ;;  %s2627_s28 = scalar_lea.hbm %s3033_s8, 1024 }
  0x8e   : > { %p2628_p12 = scmp.ne.s32.totalorder %s3033_s8, %s2627_s28  ;;  %p3334_p7 = scmp.ne.s32.totalorder %s3328_s18, 0 }
  0x8f   : > { %s2632_s16 = scalar_lea.hbm %s3271_s0, 4096  ;;  %p2633_p6 = scmp.lt.u32.totalorder %s3033_s8, %s3271_s0 }
  0x90   : > { %p2630_p2 = pnand %p2628_p12, %p3334_p7  ;;  %p2634_p9 = scmp.lt.u32.totalorder %s2632_s16, %s2627_s28 }
  0x91   : > { %p2636_p1 = scmp.lt.u32.totalorder %s2627_s28, %s3033_s8 }
  0x92   : > { %p2631_p0 = pneg %p2630_p2  ;;  %p2635_p10 = por %p2634_p9, %p2633_p6 }
  0x94   : > { %p2637_p4 = por %p2636_p1, %p2635_p10 }
  0x96   : > { %p2638_p5 = pnand %p2637_p4, %p2631_p0 }
  0x98   : > { %2641 = shalt.err (!%p2638_p5)
}
  0x99   : > { %s2642_s24 = scalar_lea.vmem %s3038_s19, 1024  ;;  %s2773_s3 = smov [#allocation2]  }
  0x9a   : > { %p2643_p11 = scmp.ne.s32.totalorder %s3038_s19, %s2642_s24  ;;  %s2647_s6 = sshll.u32 %s2773_s3, 4  ;;  %s2648_s6 = int_to_ptr.vmem [resolvable:$false] %s2647_s6 }
  0x9b   : > { %s2649_s21 = scalar_lea.vmem %s2648_s6, 2048  ;;  %p2650_p8 = scmp.lt.s32.totalorder %s3038_s19, %s2648_s6 }
  0x9c   : > { %p2645_p13 = pnand %p2643_p11, %p3334_p7  ;;  %p2651_p12 = scmp.lt.s32.totalorder %s2649_s21, %s2642_s24 }
  0x9e   : > { %p2646_p3 = pneg %p2645_p13  ;;  %p2652_p2 = por %p2651_p12, %p2650_p8 }
  0xa0   : > { %p2653_p6 = pnand %p2652_p2, %p2646_p3 }
  0xa2   : > { %2656 = shalt.err (!%p2653_p6)
}
  0xa3   : > { %p3335_p0 = scmp.ne.s32.totalorder %s3325_s17, 0  ;;  %s1914_s26 = sshll.u32 %s2765_s12, 6 }
  0xa4   : > { %s372_s28 = scalar_lea.vmem [#allocation7], %s1913_s9  ;;  %s377_s25 = scalar_lea.hbm %s3273_s2, %s1914_s26 }
  0xa5   : > { %2395 = dma.hbm_to_vmem [thread:$0]  (!%p3335_p0), %s3033_s8, 1024, %s3038_s19, %s327_s22, %s3329_s14, %s3329_s14, %s2769_s11  }
  0xa6   : > { %s379_s1 = sshll.u32 %s372_s28, 4  ;;  %s2657_s30 = scalar_lea.hbm %s377_s25, 64  ;;  %s380_s1 = int_to_ptr.vmem [resolvable:$true] %s379_s1 }
  0xa7   : > { %p2658_p9 = scmp.ne.s32.totalorder %s377_s25, %s2657_s30  ;;  %s2662_s6 = scalar_lea.hbm %s3273_s2, 256 }
  0xa8   : > { %p2663_p4 = scmp.lt.u32.totalorder %s377_s25, %s3273_s2  ;;  %p2664_p5 = scmp.lt.u32.totalorder %s2662_s6, %s2657_s30 }
  0xa9   : > { %p2660_p10 = pnand %p2658_p9, %p3334_p7  ;;  %p2666_p13 = scmp.lt.u32.totalorder %s2657_s30, %s377_s25 }
  0xaa   : > { %p2665_p11 = por %p2664_p5, %p2663_p4 }
  0xab   : > { %p2661_p1 = pneg %p2660_p10 }
  0xac   : > { %p2667_p3 = por %p2666_p13, %p2665_p11 }
  0xae   : > { %p2668_p8 = pnand %p2667_p3, %p2661_p1 }
  0xb0   : > { %2671 = shalt.err (!%p2668_p8)
}
  0xb1   : > { %s2672_s27 = scalar_lea.vmem %s380_s1, 64  ;;  %s2774_s14 = smov [#allocation7]  }
  0xb2   : > { %p2673_p12 = scmp.ne.s32.totalorder %s380_s1, %s2672_s27  ;;  %s2677_s8 = sshll.u32 %s2774_s14, 4  ;;  %s2678_s8 = int_to_ptr.vmem [resolvable:$false] %s2677_s8 }
  0xb3   : > { %s2679_s19 = scalar_lea.vmem %s2678_s8, 128  ;;  %p2680_p9 = scmp.lt.s32.totalorder %s380_s1, %s2678_s8 }
  0xb4   : > { %p2675_p2 = pnand %p2673_p12, %p3334_p7  ;;  %p2681_p10 = scmp.lt.s32.totalorder %s2679_s19, %s2672_s27 }
  0xb6   : > { %p2676_p6 = pneg %p2675_p2  ;;  %p2682_p0 = por %p2681_p10, %p2680_p9 }
  0xb8   : > { %p2683_p4 = pnand %p2682_p0, %p2676_p6 }
  0xba   : > { %2686 = shalt.err (!%p2683_p4)
}
  0xbb   : > { %p3336_p5 = scmp.ne.s32.totalorder %s3325_s17, 0  ;;  %p3337_p1 = scmp.ne.s32.totalorder %s3319_s23, 0 }
  0xbc   : > { %s3089_s18 = sand.u32 (!%p3337_p1), 1, %s2757_s10   ;;  %p3338_p7 = scmp.ne.s32.totalorder (!%p3337_p1), %s3314_s20, 0 }
  0xbd   : > { %2401 = dma.hbm_to_vmem [thread:$0]  (!%p3336_p5), %s377_s25, 64, %s380_s1, %s2953_s15  }
  0xbe   : > { %388 = sbr.rel (%p3337_p1) target bundleno = 2624 (0xa40), region = 56  ;;  %s1916_s9 = sshll.u32 (!%p3337_p1), %s3089_s18, 6 }
  0xbf   : > { %s391_s22 = scalar_lea.sflag (!%p3337_p1), [#allocation3], %s3089_s18  ;;  %s3093_s26 = scalar_lea.vmem (!%p3337_p1), [#allocation2], %s1916_s9 }
  0xc5   : > { %2732 = dma.done.wait (%p3338_p7), %s391_s22, 1024  }
  0xc6   : > { %2734 = vsyncadd (%p3338_p7), %s391_s22, 4294966272  ;;  %s399_s17 = sand.u32 1, %s2849_s13   ;;  %s3100_s15 = scalar_lea.vmem [#allocation5], %s1916_s9 }
  0xc7   : > { %s400_s23 = scalar_lea.sflag [#allocation6], %s399_s17 }
  0xc8   : > { %2736 = dma.done.wait (%p3338_p7), %s400_s23, 1088  }
  0xc9   : > { %2738 = vsyncadd (%p3338_p7), %s400_s23, 4294966208  ;;  %s1918_s28 = sshll.u32 %s3089_s18, 2  ;;  %p3339_p0 = scmp.eq.s32.totalorder %s2849_s13, 0 }
  0xca   : > { %s3107_s1 = scalar_lea.vmem [#allocation7], %s1918_s28 }
  0xcb   : > { %2740 = dma.done.wait (%p3339_p0), [#allocation9], 4096   ;;  %p3340_p11 = pmov %p3339_p0 }
  0xcc   : > { %p3341_p13 = pmov %p3339_p0 }
  0xcd   : > { %2742 = vsyncadd (%p3340_p11), [#allocation9], 4294963200 }
  0xce   : > { %2744 = dma.done.wait (%p3341_p13), [#allocation12], 1024   ;;  %p3342_p3 = pmov %p3339_p0 }
  0xcf   : > { %v2453_v0 = vld [vmem:[%s3100_s15] sm:$0xff]   ;;  %v2454_v1 = vld [vmem:[%s3100_s15 + $0x8] sm:$0xff]   ;;  %v2455_v2 = vld [vmem:[%s3100_s15 + $0x10] sm:$0xff]   ;;  %v720_v55 = vlaneseq  ;;  %vm2776_vm0 = vmmov 0   ;;  %s3343_s30 = sld [smem:[#allocation27_spill]]  ;;  %s3344_s6 = sld [smem:[#allocation28_spill]] }
  0xd0   : > { %2746 = vsyncadd (%p3342_p3), [#allocation12], 4294966272  ;;  %2110 = vmatprep.subr.bf16.mxu0 %v2453_v0  ;;  %v2456_v3 = vld [vmem:[%s3100_s15 + $0x18] sm:$0xff]   ;;  %v3122_v4 = vld [vmem:[%s3093_s26] sm:$0xff]   ;;  %s3345_s21 = sld [smem:[#allocation23_spill]]  ;;  %s1922_s11 = sshll.u32 %s3089_s18, 3 }
  0xd1   : > { %2111 = vmatpush3.bf16.msra.mxu0 %v2453_v0  ;;  %2126 = vmatprep.mubr.bf16.mxu0 %v3122_v4  ;;  %v2457_v5 = vld [vmem:[%s3100_s15 + $0x20] sm:$0xff]   ;;  %v2458_v6 = vld [vmem:[%s3100_s15 + $0x28] sm:$0xff]   ;;  %v2470_v8 = vld [vmem:[#allocation8 + $0x8] sm:$0xff]   ;;  %v3159_v56 = vshrl.u32 %v720_v55, 7  ;;  %s1982_s27 = sshll.u32 %s2849_s13, 7  ;;  %s468_s14 = scalar_lea.vmem [#allocation13], %s1922_s11 }
  0xd2   : > { %2112 = vmatprep.subr.bf16.mxu0 %v2454_v1  ;;  %v2469_v7 = vld [vmem:[#allocation8] sm:$0xff]   ;;  %v2459_v9 = vld [vmem:[%s3100_s15 + $0x30] sm:$0xff]   ;;  %v2471_v10 = vld [vmem:[#allocation8 + $0x10] sm:$0xff]   ;;  %s1759_s8 = sshll.u32 %s468_s14, 4  ;;  %s3346_s22 = sld [smem:[#allocation29_spill]]  ;;  %s3230_s8 = int_to_ptr.vmem [resolvable:$true] %s1759_s8 }
  0xd3   : > { %2142 = vmatprep.subr.bf16.mxu1 %v2469_v7  ;;  %v2460_v11 = vld [vmem:[%s3100_s15 + $0x38] sm:$0xff]   ;;  %v2472_v12 = vld [vmem:[#allocation8 + $0x18] sm:$0xff]   ;;  %v2473_v13 = vld [vmem:[#allocation8 + $0x20] sm:$0xff]   ;;  %v722_v57 = vsub.s32 0, %v3159_v56  ;;  %s1746_s17 = scalar_lea.sflag [#allocation4], %s3089_s18  ;;  %s2687_s23 = scalar_lea.vmem %s3230_s8, 128 }
  0xd4   : > { %2143 = vmatpush3.bf16.msra.mxu1 %v2469_v7  ;;  %v3130_v14 = vld [vmem:[%s3093_s26 + $0x8] sm:$0xff]   ;;  %v3133_v15 = vld [vmem:[%s3093_s26 + $0x10] sm:$0xff]   ;;  %v2475_v17 = vld [vmem:[#allocation8 + $0x30] sm:$0xff]   ;;  %p2688_p8 = scmp.ne.s32.totalorder %s3230_s8, %s2687_s23  ;;  %s2777_s13 = smov [#allocation13]  }
  0xd5   : > { %2113 = vmatpush3.bf16.msra.mxu0 %v2454_v1  ;;  %2144 = vmatprep.subr.bf16.mxu1 %v2470_v8  ;;  %v2474_v16 = vld [vmem:[#allocation8 + $0x28] sm:$0xff]   ;;  %v3138_v18 = vld [vmem:[%s3093_s26 + $0x18] sm:$0xff]   ;;  %v3141_v19 = vld [vmem:[%s3093_s26 + $0x20] sm:$0xff]   ;;  %s2691_s15 = sshll.u32 %s2777_s13, 4  ;;  %s2692_s15 = int_to_ptr.vmem [resolvable:$false] %s2691_s15 }
  0xd6   : > { %2114 = vmatprep.subr.bf16.mxu0 %v2455_v2  ;;  %v3146_v20 = vld [vmem:[%s3093_s26 + $0x28] sm:$0xff]   ;;  %v3149_v21 = vld [vmem:[%s3093_s26 + $0x30] sm:$0xff]   ;;  %v3154_v22 = vld [vmem:[%s3093_s26 + $0x38] sm:$0xff]   ;;  %p3347_p12 = scmp.ne.s32.totalorder %s3345_s21, 0  ;;  %s2693_s28 = scalar_lea.vmem %s2692_s15, 256 }
  0xd7   : > { %v2476_v23 = vld [vmem:[#allocation8 + $0x38] sm:$0xff]   ;;  %v2477_v48 = vld [vmem:[#allocation8 + $0x40] sm:$0xff]   ;;  %v2478_v49 = vld [vmem:[#allocation8 + $0x48] sm:$0xff]   ;;  %p2694_p9 = scmp.lt.s32.totalorder %s3230_s8, %s2692_s15  ;;  %p2695_p10 = scmp.lt.s32.totalorder %s2693_s28, %s2687_s23 }
  0xd8   : > { %2145 = vmatpush3.bf16.msra.mxu1 %v2470_v8  ;;  %v2479_v50 = vld [vmem:[#allocation8 + $0x50] sm:$0xff]   ;;  %v2480_v51 = vld [vmem:[#allocation8 + $0x58] sm:$0xff]   ;;  %v2481_v52 = vld [vmem:[#allocation8 + $0x60] sm:$0xff]   ;;  %s3228_s26 = scalar_lea.hbm %s3346_s22, %s1982_s27  ;;  %p2689_p2 = pnand %p2688_p8, %p3347_p12 }
  0xd9   : > { %2115 = vmatpush3.bf16.msra.mxu0 %v2455_v2  ;;  %2146 = vmatprep.subr.bf16.mxu1 %v2471_v10  ;;  %v2482_v53 = vld [vmem:[#allocation8 + $0x68] sm:$0xff]   ;;  %v2483_v54 = vld [vmem:[#allocation8 + $0x70] sm:$0xff]   ;;  %v3165_v58 = vld [vmem:[%s3275_s4] sm:$0x7]  ;;  %p2696_p4 = por %p2695_p10, %p2694_p9 }
  0xda   : > { %2116 = vmatprep.subr.bf16.mxu0 %v2456_v3  ;;  %v723_v59 = vrot.slane %v3165_v58, %v722_v57  ;;  %p2690_p6 = pneg %p2689_p2 }
  0xdc   : > { %2147 = vmatpush3.bf16.msra.mxu1 %v2471_v10  ;;  %p2697_p5 = pnand %p2696_p4, %p2690_p6 }
  0xdd   : > { %2117 = vmatpush3.bf16.msra.mxu0 %v2456_v3  ;;  %2148 = vmatprep.subr.bf16.mxu1 %v2472_v12 }
  0xde   : > { %2118 = vmatprep.subr.bf16.mxu0 %v2457_v5 }
  0xe0   : > { %2149 = vmatpush3.bf16.msra.mxu1 %v2472_v12 }
  0xe1   : > { %2119 = vmatpush3.bf16.msra.mxu0 %v2457_v5  ;;  %2150 = vmatprep.subr.bf16.mxu1 %v2473_v13 }
  0xe2   : > { %2120 = vmatprep.subr.bf16.mxu0 %v2458_v6 }
  0xe4   : > { %2151 = vmatpush3.bf16.msra.mxu1 %v2473_v13 }
  0xe5   : > { %2121 = vmatpush3.bf16.msra.mxu0 %v2458_v6  ;;  %2152 = vmatprep.subr.bf16.mxu1 %v2474_v16 }
  0xe6   : > { %2122 = vmatprep.subr.bf16.mxu0 %v2459_v9 }
  0xe8   : > { %2153 = vmatpush3.bf16.msra.mxu1 %v2474_v16 }
  0xe9   : > { %2123 = vmatpush3.bf16.msra.mxu0 %v2459_v9  ;;  %2154 = vmatprep.subr.bf16.mxu1 %v2475_v17 }
  0xea   : > { %2124 = vmatprep.subr.bf16.mxu0 %v2460_v11 }
  0xec   : > { %2155 = vmatpush3.bf16.msra.mxu1 %v2475_v17 }
  0xed   : > { %2125 = vmatpush3.bf16.msra.mxu0 %v2460_v11  ;;  %2156 = vmatprep.subr.bf16.mxu1 %v2476_v23 }
  0xf0   : > { %2127 = vmatmul.mubr.bf16.vlgmr.msra.gmra.mrb[0].mxu0 %v3130_v14  ;;  %2157 = vmatpush3.bf16.msra.mxu1 %v2476_v23 }
  0xf1   : > { %2130 = vmatprep.mubr.bf16.mxu0 %v3133_v15  ;;  %2206 = vmatprep.subr.bf16.mxu1 %v2477_v48 }
  0xf8   : > { %2131 = vmatmul.mubr.bf16.gmra.mrb[4].mxu0 %v3138_v18 }
  0xf9   : > { %2134 = vmatprep.mubr.bf16.mxu0 %v3141_v19 }
 0x100   : > { %2135 = vmatmul.mubr.bf16.gmra.mrb[8].mxu0 %v3146_v20 }
 0x101   : > { %2138 = vmatprep.mubr.bf16.mxu0 %v3149_v21 }
 0x108   : > { %2139 = vmatmul.mubr.bf16.gmra.mrb[12].mxu0 %v3154_v22 }
 0x109   : > { %2190 = vmatprep.mubr.bf16.mxu0 %v3122_v4 }
 0x1c3   : > { %v2128_v24 = vpop.f32.mrb[0].mxu0 }
 0x1c4   : > { %v633_v25 = vpop.f32.mrb[1].mxu0 }
 0x1c5   : > { %v2129_v26 = vpop.f32.mrb[2].mxu0 }
 0x1c6   : > { %v697_v27 = vpack.c.bf16 %v2129_v26, %v2128_v24  ;;  %v636_v28 = vpop.f32.mrb[3].mxu0 }
 0x1c7   : > { %v696_v29 = vpack.c.bf16 %v636_v28, %v633_v25 }
 0x1c9   : > { %2158 = vmatprep.mubr.bf16.mxu1 %v696_v29 }
 0x1ca   : > { %2159 = vmatmul.mubr.bf16.vlgmr.msra.gmra.mrb[0].mxu1 %v697_v27 }
 0x1cb   : > { %v2132_v30 = vpop.f32.mrb[4].mxu0  ;;  %2207 = vmatpush3.bf16.msra.mxu1 %v2477_v48 }
 0x1cc   : > { %v649_v31 = vpop.f32.mrb[5].mxu0  ;;  %2208 = vmatprep.subr.bf16.mxu1 %v2478_v49 }
 0x1cd   : > { %v2133_v32 = vpop.f32.mrb[6].mxu0 }
 0x1ce   : > { %v699_v33 = vpack.c.bf16 %v2133_v32, %v2132_v30  ;;  %v652_v34 = vpop.f32.mrb[7].mxu0 }
 0x1cf   : > { %v698_v35 = vpack.c.bf16 %v652_v34, %v649_v31  ;;  %2209 = vmatpush3.bf16.msra.mxu1 %v2478_v49 }
 0x1d0   : > { %2210 = vmatprep.subr.bf16.mxu1 %v2479_v50 }
 0x1d1   : > { %2162 = vmatprep.mubr.bf16.mxu1 %v698_v35 }
 0x1d2   : > { %2163 = vmatmul.mubr.bf16.gmra.mrb[4].mxu1 %v699_v33 }
 0x1d3   : > { %v2136_v36 = vpop.f32.mrb[8].mxu0  ;;  %2211 = vmatpush3.bf16.msra.mxu1 %v2479_v50 }
 0x1d4   : > { %v665_v37 = vpop.f32.mrb[9].mxu0  ;;  %2212 = vmatprep.subr.bf16.mxu1 %v2480_v51 }
 0x1d5   : > { %v2137_v38 = vpop.f32.mrb[10].mxu0 }
 0x1d6   : > { %v701_v39 = vpack.c.bf16 %v2137_v38, %v2136_v36  ;;  %v668_v40 = vpop.f32.mrb[11].mxu0 }
 0x1d7   : > { %v700_v41 = vpack.c.bf16 %v668_v40, %v665_v37  ;;  %2213 = vmatpush3.bf16.msra.mxu1 %v2480_v51 }
 0x1d8   : > { %2214 = vmatprep.subr.bf16.mxu1 %v2481_v52 }
 0x1d9   : > { %2166 = vmatprep.mubr.bf16.mxu1 %v700_v41 }
 0x1da   : > { %2167 = vmatmul.mubr.bf16.gmra.mrb[8].mxu1 %v701_v39 }
 0x1db   : > { %v2140_v42 = vpop.f32.mrb[12].mxu0  ;;  %2215 = vmatpush3.bf16.msra.mxu1 %v2481_v52 }
 0x1dc   : > { %v681_v43 = vpop.f32.mrb[13].mxu0  ;;  %2216 = vmatprep.subr.bf16.mxu1 %v2482_v53 }
 0x1dd   : > { %v2141_v44 = vpop.f32.mrb[14].mxu0 }
 0x1de   : > { %v703_v45 = vpack.c.bf16 %v2141_v44, %v2140_v42  ;;  %v684_v46 = vpop.f32.mrb[15].mxu0 }
 0x1df   : > { %v702_v47 = vpack.c.bf16 %v684_v46, %v681_v43  ;;  %2217 = vmatpush3.bf16.msra.mxu1 %v2482_v53 }
 0x1e0   : > { %2218 = vmatprep.subr.bf16.mxu1 %v2483_v54 }
 0x1e1   : > { %2170 = vmatprep.mubr.bf16.mxu1 %v702_v47 }
 0x1e2   : > { %2171 = vmatmul.mubr.bf16.gmra.mrb[12].mxu1 %v703_v45 }
 0x1e3   : > { %2219 = vmatpush3.bf16.msra.mxu1 %v2483_v54 }
 0x29d   : > { %v2160_v60 = vpop.f32.mrb[0].mxu1 }
 0x29e   : > { %v815_v61 = vadd.f32 %v2160_v60, %v723_v59  ;;  %v806_v62 = vpop.f32.mrb[1].mxu1 }
 0x29f   : > { %v807_v63 = vadd.f32 %v806_v62, %v723_v59  ;;  %v2161_v0 = vpop.f32.mrb[2].mxu1 }
 0x2a0   : > { %v818_v1 = vadd.f32 %v2161_v0, %v723_v59  ;;  %v809_v2 = vpop.f32.mrb[3].mxu1  ;;  %v871_v5 = vmax.f32 %v815_v61, 0.0 }
 0x2a1   : > { %v810_v3 = vadd.f32 %v809_v2, %v723_v59  ;;  %v869_v7 = vmax.f32 %v807_v63, 0.0 }
 0x2a2   : > { %v872_v6 = vmax.f32 %v818_v1, 0.0 }
 0x2a3   : > { %v870_v8 = vmax.f32 %v810_v3, 0.0 }
 0x2a4   : > { %v886_v9 = vpack.c.bf16 %v872_v6, %v871_v5 }
 0x2a5   : > { %v885_v10 = vpack.c.bf16 %v870_v8, %v869_v7  ;;  %v2164_v11 = vpop.f32.mrb[4].mxu1 }
 0x2a6   : > { %v831_v12 = vadd.f32 %v2164_v11, %v723_v59  ;;  %v822_v13 = vpop.f32.mrb[5].mxu1 }
 0x2a7   : > { %v823_v16 = vadd.f32 %v822_v13, %v723_v59  ;;  %v2165_v17 = vpop.f32.mrb[6].mxu1  ;;  %2174 = vmatprep.subr.bf16.mxu0 %v885_v10 }
 0x2a8   : > { %v834_v23 = vadd.f32 %v2165_v17, %v723_v59  ;;  %v825_v24 = vpop.f32.mrb[7].mxu1  ;;  %2175 = vmatpush3.bf16.msra.mxu0 %v885_v10  ;;  %v875_v26 = vmax.f32 %v831_v12, 0.0 }
 0x2a9   : > { %v826_v25 = vadd.f32 %v825_v24, %v723_v59  ;;  %2176 = vmatprep.subr.bf16.mxu0 %v886_v9  ;;  %v873_v28 = vmax.f32 %v823_v16, 0.0 }
 0x2aa   : > { %v876_v27 = vmax.f32 %v834_v23, 0.0 }
 0x2ab   : > { %v874_v29 = vmax.f32 %v826_v25, 0.0 }
 0x2ac   : > { %v888_v30 = vpack.c.bf16 %v876_v27, %v875_v26  ;;  %2177 = vmatpush3.bf16.msra.mxu0 %v886_v9 }
 0x2ad   : > { %v887_v31 = vpack.c.bf16 %v874_v29, %v873_v28  ;;  %v2168_v32 = vpop.f32.mrb[8].mxu1 }
 0x2ae   : > { %v847_v33 = vadd.f32 %v2168_v32, %v723_v59  ;;  %v838_v34 = vpop.f32.mrb[9].mxu1  ;;  %v2486_v32 = vld [vmem:[#allocation8 + $0x88] sm:$0xff]  }
 0x2af   : > { %v839_v35 = vadd.f32 %v838_v34, %v723_v59  ;;  %v2169_v36 = vpop.f32.mrb[10].mxu1  ;;  %2178 = vmatprep.subr.bf16.mxu0 %v887_v31  ;;  %v2488_v34 = vld [vmem:[#allocation8 + $0x98] sm:$0xff]  }
 0x2b0   : > { %v850_v37 = vadd.f32 %v2169_v36, %v723_v59  ;;  %v841_v38 = vpop.f32.mrb[11].mxu1  ;;  %2179 = vmatpush3.bf16.msra.mxu0 %v887_v31  ;;  %v879_v40 = vmax.f32 %v847_v33, 0.0  ;;  %v2485_v31 = vld [vmem:[#allocation8 + $0x80] sm:$0xff]   ;;  %v2487_v33 = vld [vmem:[#allocation8 + $0x90] sm:$0xff]   ;;  %v2490_v36 = vld [vmem:[#allocation8 + $0xa8] sm:$0xff]  }
 0x2b1   : > { %v842_v39 = vadd.f32 %v841_v38, %v723_v59  ;;  %2180 = vmatprep.subr.bf16.mxu0 %v888_v30  ;;  %v877_v42 = vmax.f32 %v839_v35, 0.0  ;;  %v2489_v35 = vld [vmem:[#allocation8 + $0xa0] sm:$0xff]   ;;  %v1017_v38 = vsub.s32 1, %v3159_v56 }
 0x2b2   : > { %v880_v41 = vmax.f32 %v850_v37, 0.0  ;;  %v2491_v37 = vld [vmem:[#allocation8 + $0xb0] sm:$0xff]  }
 0x2b3   : > { %v878_v43 = vmax.f32 %v842_v39, 0.0  ;;  %v1018_v39 = vrot.slane %v3165_v58, %v1017_v38 }
 0x2b4   : > { %v890_v44 = vpack.c.bf16 %v880_v41, %v879_v40  ;;  %2181 = vmatpush3.bf16.msra.mxu0 %v888_v30 }
 0x2b5   : > { %v889_v45 = vpack.c.bf16 %v878_v43, %v877_v42  ;;  %v2172_v46 = vpop.f32.mrb[12].mxu1 }
 0x2b6   : > { %v863_v47 = vadd.f32 %v2172_v46, %v723_v59  ;;  %v854_v48 = vpop.f32.mrb[13].mxu1 }
 0x2b7   : > { %v855_v49 = vadd.f32 %v854_v48, %v723_v59  ;;  %v2173_v50 = vpop.f32.mrb[14].mxu1  ;;  %2182 = vmatprep.subr.bf16.mxu0 %v889_v45 }
 0x2b8   : > { %v866_v51 = vadd.f32 %v2173_v50, %v723_v59  ;;  %v857_v52 = vpop.f32.mrb[15].mxu1  ;;  %2183 = vmatpush3.bf16.msra.mxu0 %v889_v45  ;;  %v883_v54 = vmax.f32 %v863_v47, 0.0 }
 0x2b9   : > { %v858_v53 = vadd.f32 %v857_v52, %v723_v59  ;;  %2184 = vmatprep.subr.bf16.mxu0 %v890_v44  ;;  %v881_v60 = vmax.f32 %v855_v49, 0.0  ;;  %v2484_v59 = vld [vmem:[#allocation8 + $0x78] sm:$0xff]  }
 0x2ba   : > { %v884_v57 = vmax.f32 %v866_v51, 0.0  ;;  %2220 = vmatprep.subr.bf16.mxu1 %v2484_v59 }
 0x2bb   : > { %v882_v61 = vmax.f32 %v858_v53, 0.0  ;;  %2221 = vmatpush3.bf16.msra.mxu1 %v2484_v59 }
 0x2bc   : > { %v892_v62 = vpack.c.bf16 %v884_v57, %v883_v54  ;;  %2185 = vmatpush3.bf16.msra.mxu0 %v890_v44  ;;  %2270 = vmatprep.subr.bf16.mxu1 %v2485_v31 }
 0x2bd   : > { %v891_v63 = vpack.c.bf16 %v882_v61, %v881_v60 }
 0x2bf   : > { %2186 = vmatprep.subr.bf16.mxu0 %v891_v63 }
 0x2c0   : > { %2187 = vmatpush3.bf16.msra.mxu0 %v891_v63 }
 0x2c1   : > { %2188 = vmatprep.subr.bf16.mxu0 %v892_v62 }
 0x2c4   : > { %2189 = vmatpush3.bf16.msra.mxu0 %v892_v62 }
 0x2c7   : > { %2191 = vmatmul.mubr.bf16.vlgmr.msra.gmra.mrb[16].mxu0 %v3130_v14 }
 0x2c8   : > { %2194 = vmatprep.mubr.bf16.mxu0 %v3133_v15 }
 0x2cf   : > { %2195 = vmatmul.mubr.bf16.gmra.mrb[20].mxu0 %v3138_v18 }
 0x2d0   : > { %2198 = vmatprep.mubr.bf16.mxu0 %v3141_v19 }
 0x2d7   : > { %2199 = vmatmul.mubr.bf16.gmra.mrb[24].mxu0 %v3146_v20 }
 0x2d8   : > { %2202 = vmatprep.mubr.bf16.mxu0 %v3149_v21 }
 0x2df   : > { %2203 = vmatmul.mubr.bf16.gmra.mrb[28].mxu0 %v3154_v22 }
 0x2e0   : > { %2254 = vmatprep.mubr.bf16.mxu0 %v3122_v4 }
 0x39a   : > { %v2192_v0 = vpop.f32.mrb[16].mxu0 }
 0x39b   : > { %v927_v1 = vpop.f32.mrb[17].mxu0 }
 0x39c   : > { %v2193_v2 = vpop.f32.mrb[18].mxu0 }
 0x39d   : > { %v991_v3 = vpack.c.bf16 %v2193_v2, %v2192_v0  ;;  %v930_v5 = vpop.f32.mrb[19].mxu0 }
 0x39e   : > { %v990_v6 = vpack.c.bf16 %v930_v5, %v927_v1 }
 0x3a0   : > { %2222 = vmatprep.mubr.bf16.mxu1 %v990_v6 }
 0x3a1   : > { %2223 = vmatmul.mubr.bf16.vlgmr.msra.gmra.mrb[16].mxu1 %v991_v3 }
 0x3a2   : > { %v2196_v7 = vpop.f32.mrb[20].mxu0  ;;  %2271 = vmatpush3.bf16.msra.mxu1 %v2485_v31 }
 0x3a3   : > { %v943_v8 = vpop.f32.mrb[21].mxu0  ;;  %2272 = vmatprep.subr.bf16.mxu1 %v2486_v32 }
 0x3a4   : > { %v2197_v9 = vpop.f32.mrb[22].mxu0 }
 0x3a5   : > { %v993_v10 = vpack.c.bf16 %v2197_v9, %v2196_v7  ;;  %v946_v11 = vpop.f32.mrb[23].mxu0 }
 0x3a6   : > { %v992_v12 = vpack.c.bf16 %v946_v11, %v943_v8  ;;  %2273 = vmatpush3.bf16.msra.mxu1 %v2486_v32 }
 0x3a7   : > { %2274 = vmatprep.subr.bf16.mxu1 %v2487_v33 }
 0x3a8   : > { %2226 = vmatprep.mubr.bf16.mxu1 %v992_v12 }
 0x3a9   : > { %2227 = vmatmul.mubr.bf16.gmra.mrb[20].mxu1 %v993_v10 }
 0x3aa   : > { %v2200_v4 = vpop.f32.mrb[24].mxu0  ;;  %2275 = vmatpush3.bf16.msra.mxu1 %v2487_v33 }
 0x3ab   : > { %v959_v13 = vpop.f32.mrb[25].mxu0  ;;  %2276 = vmatprep.subr.bf16.mxu1 %v2488_v34 }
 0x3ac   : > { %v2201_v16 = vpop.f32.mrb[26].mxu0 }
 0x3ad   : > { %v995_v17 = vpack.c.bf16 %v2201_v16, %v2200_v4  ;;  %v962_v23 = vpop.f32.mrb[27].mxu0 }
 0x3ae   : > { %v994_v24 = vpack.c.bf16 %v962_v23, %v959_v13  ;;  %2277 = vmatpush3.bf16.msra.mxu1 %v2488_v34 }
 0x3af   : > { %2278 = vmatprep.subr.bf16.mxu1 %v2489_v35 }
 0x3b0   : > { %2230 = vmatprep.mubr.bf16.mxu1 %v994_v24 }
 0x3b1   : > { %2231 = vmatmul.mubr.bf16.gmra.mrb[24].mxu1 %v995_v17 }
 0x3b2   : > { %v2204_v25 = vpop.f32.mrb[28].mxu0  ;;  %2279 = vmatpush3.bf16.msra.mxu1 %v2489_v35 }
 0x3b3   : > { %v975_v26 = vpop.f32.mrb[29].mxu0  ;;  %2280 = vmatprep.subr.bf16.mxu1 %v2490_v36 }
 0x3b4   : > { %v2205_v27 = vpop.f32.mrb[30].mxu0 }
 0x3b5   : > { %v997_v28 = vpack.c.bf16 %v2205_v27, %v2204_v25  ;;  %v978_v29 = vpop.f32.mrb[31].mxu0 }
 0x3b6   : > { %v996_v30 = vpack.c.bf16 %v978_v29, %v975_v26  ;;  %2281 = vmatpush3.bf16.msra.mxu1 %v2490_v36 }
 0x3b7   : > { %2282 = vmatprep.subr.bf16.mxu1 %v2491_v37 }
 0x3b8   : > { %2234 = vmatprep.mubr.bf16.mxu1 %v996_v30 }
 0x3b9   : > { %2235 = vmatmul.mubr.bf16.gmra.mrb[28].mxu1 %v997_v28 }
 0x3ba   : > { %2283 = vmatpush3.bf16.msra.mxu1 %v2491_v37 }
 0x474   : > { %v2224_v40 = vpop.f32.mrb[16].mxu1 }
 0x475   : > { %v1110_v41 = vadd.f32 %v2224_v40, %v1018_v39  ;;  %v1101_v42 = vpop.f32.mrb[17].mxu1 }
 0x476   : > { %v1102_v43 = vadd.f32 %v1101_v42, %v1018_v39  ;;  %v2225_v44 = vpop.f32.mrb[18].mxu1 }
 0x477   : > { %v1113_v45 = vadd.f32 %v2225_v44, %v1018_v39  ;;  %v1104_v46 = vpop.f32.mrb[19].mxu1  ;;  %v1166_v48 = vmax.f32 %v1110_v41, 0.0 }
 0x478   : > { %v1105_v47 = vadd.f32 %v1104_v46, %v1018_v39  ;;  %v1164_v50 = vmax.f32 %v1102_v43, 0.0 }
 0x479   : > { %v1167_v49 = vmax.f32 %v1113_v45, 0.0 }
 0x47a   : > { %v1165_v51 = vmax.f32 %v1105_v47, 0.0 }
 0x47b   : > { %v1181_v52 = vpack.c.bf16 %v1167_v49, %v1166_v48 }
 0x47c   : > { %v1180_v53 = vpack.c.bf16 %v1165_v51, %v1164_v50  ;;  %v2228_v54 = vpop.f32.mrb[20].mxu1 }
 0x47d   : > { %v1126_v57 = vadd.f32 %v2228_v54, %v1018_v39  ;;  %v1117_v60 = vpop.f32.mrb[21].mxu1 }
 0x47e   : > { %v1118_v56 = vadd.f32 %v1117_v60, %v1018_v39  ;;  %v2229_v61 = vpop.f32.mrb[22].mxu1  ;;  %2238 = vmatprep.subr.bf16.mxu0 %v1180_v53 }
 0x47f   : > { %v1129_v58 = vadd.f32 %v2229_v61, %v1018_v39  ;;  %v1120_v62 = vpop.f32.mrb[23].mxu1  ;;  %2239 = vmatpush3.bf16.msra.mxu0 %v1180_v53  ;;  %v1170_v59 = vmax.f32 %v1126_v57, 0.0  ;;  %v2775_v61 = vmov 0.0  }
 0x480   : > { %v1121_v63 = vadd.f32 %v1120_v62, %v1018_v39  ;;  %2240 = vmatprep.subr.bf16.mxu0 %v1181_v52  ;;  %v1168_v1 = vmax.f32 %v1118_v56, 0.0  ;;  %v2494_v62 = vld [vmem:[#allocation10 + $0x8] sm:$0xff]  }
 0x481   : > { %v1171_v0 = vmax.f32 %v1129_v58, 0.0  ;;  %v2493_v58 = vld [vmem:[#allocation10] sm:$0xff]  }
 0x482   : > { %v1169_v2 = vmax.f32 %v1121_v63, 0.0  ;;  %v2495_v63 = vld [vmem:[#allocation10 + $0x10] sm:$0xff]  }
 0x483   : > { %v1183_v3 = vpack.c.bf16 %v1171_v0, %v1170_v59  ;;  %2241 = vmatpush3.bf16.msra.mxu0 %v1181_v52  ;;  %v2496_v59 = vld [vmem:[#allocation10 + $0x18] sm:$0xff]   ;;  %v2497_v0 = vld [vmem:[#allocation10 + $0x20] sm:$0xff]  }
 0x484   : > { %v1182_v5 = vpack.c.bf16 %v1169_v2, %v1168_v1  ;;  %v2232_v6 = vpop.f32.mrb[24].mxu1  ;;  %v2498_v1 = vld [vmem:[#allocation10 + $0x28] sm:$0xff]   ;;  %v2499_v2 = vld [vmem:[#allocation10 + $0x30] sm:$0xff]  }
 0x485   : > { %v1142_v7 = vadd.f32 %v2232_v6, %v1018_v39  ;;  %v1133_v8 = vpop.f32.mrb[25].mxu1 }
 0x486   : > { %v1134_v9 = vadd.f32 %v1133_v8, %v1018_v39  ;;  %v2233_v10 = vpop.f32.mrb[26].mxu1  ;;  %2242 = vmatprep.subr.bf16.mxu0 %v1182_v5 }
 0x487   : > { %v1145_v11 = vadd.f32 %v2233_v10, %v1018_v39  ;;  %v1136_v12 = vpop.f32.mrb[27].mxu1  ;;  %2243 = vmatpush3.bf16.msra.mxu0 %v1182_v5  ;;  %v1174_v13 = vmax.f32 %v1142_v7, 0.0 }
 0x488   : > { %v1137_v4 = vadd.f32 %v1136_v12, %v1018_v39  ;;  %2244 = vmatprep.subr.bf16.mxu0 %v1183_v3  ;;  %v1172_v17 = vmax.f32 %v1134_v9, 0.0 }
 0x489   : > { %v1175_v16 = vmax.f32 %v1145_v11, 0.0 }
 0x48a   : > { %v1173_v23 = vmax.f32 %v1137_v4, 0.0 }
 0x48b   : > { %v1185_v24 = vpack.c.bf16 %v1175_v16, %v1174_v13  ;;  %2245 = vmatpush3.bf16.msra.mxu0 %v1183_v3 }
 0x48c   : > { %v1184_v25 = vpack.c.bf16 %v1173_v23, %v1172_v17  ;;  %v2236_v26 = vpop.f32.mrb[28].mxu1 }
 0x48d   : > { %v1158_v27 = vadd.f32 %v2236_v26, %v1018_v39  ;;  %v1149_v28 = vpop.f32.mrb[29].mxu1 }
 0x48e   : > { %v1150_v29 = vadd.f32 %v1149_v28, %v1018_v39  ;;  %v2237_v30 = vpop.f32.mrb[30].mxu1  ;;  %2246 = vmatprep.subr.bf16.mxu0 %v1184_v25 }
 0x48f   : > { %v1161_v31 = vadd.f32 %v2237_v30, %v1018_v39  ;;  %v1152_v32 = vpop.f32.mrb[31].mxu1  ;;  %2247 = vmatpush3.bf16.msra.mxu0 %v1184_v25  ;;  %v1178_v34 = vmax.f32 %v1158_v27, 0.0 }
 0x490   : > { %v1153_v33 = vadd.f32 %v1152_v32, %v1018_v39  ;;  %2248 = vmatprep.subr.bf16.mxu0 %v1185_v24  ;;  %v1176_v36 = vmax.f32 %v1150_v29, 0.0  ;;  %v2492_v39 = vld [vmem:[#allocation8 + $0xb8] sm:$0xff]  }
 0x491   : > { %v1179_v35 = vmax.f32 %v1161_v31, 0.0  ;;  %2284 = vmatprep.subr.bf16.mxu1 %v2492_v39 }
 0x492   : > { %v1177_v37 = vmax.f32 %v1153_v33, 0.0  ;;  %2285 = vmatpush3.bf16.msra.mxu1 %v2492_v39  ;;  %v2505_v39 = vld [vmem:[#allocation11 + $0x20] sm:$0xff]  }
 0x493   : > { %v1187_v38 = vpack.c.bf16 %v1179_v35, %v1178_v34  ;;  %2249 = vmatpush3.bf16.msra.mxu0 %v1185_v24  ;;  %2322 = vmatprep.subr.bf16.mxu1 %v2775_v61  ;;  %v1463_v34 = vld [vmem:[%s3107_s1] sm:$0xf] }
 0x494   : > { %v1186_v40 = vpack.c.bf16 %v1177_v37, %v1176_v36  ;;  %v2500_v35 = vld [vmem:[#allocation10 + $0x38] sm:$0xff]   ;;  %v2501_v36 = vld [vmem:[#allocation11] sm:$0xff]   ;;  %v2502_v37 = vld [vmem:[#allocation11 + $0x8] sm:$0xff]  }
 0x496   : > { %2250 = vmatprep.subr.bf16.mxu0 %v1186_v40 }
 0x497   : > { %2251 = vmatpush3.bf16.msra.mxu0 %v1186_v40  ;;  %v2504_v40 = vld [vmem:[#allocation11 + $0x18] sm:$0xff]  }
 0x498   : > { %2252 = vmatprep.subr.bf16.mxu0 %v1187_v38 }
 0x49b   : > { %2253 = vmatpush3.bf16.msra.mxu0 %v1187_v38  ;;  %v2503_v38 = vld [vmem:[#allocation11 + $0x10] sm:$0xff]  }
 0x49c   : > { %2302 = vmatprep.subr.bf16.mxu0 %v2775_v61 }
 0x49e   : > { %2255 = vmatmul.mubr.bf16.vlgmr.msra.gmra.mrb[32].mxu0 %v3130_v14 }
 0x49f   : > { %2258 = vmatprep.mubr.bf16.mxu0 %v3133_v15 }
 0x4a6   : > { %2259 = vmatmul.mubr.bf16.gmra.mrb[36].mxu0 %v3138_v18 }
 0x4a7   : > { %2262 = vmatprep.mubr.bf16.mxu0 %v3141_v19 }
 0x4ae   : > { %2263 = vmatmul.mubr.bf16.gmra.mrb[40].mxu0 %v3146_v20 }
 0x4af   : > { %2266 = vmatprep.mubr.bf16.mxu0 %v3149_v21 }
 0x4b6   : > { %2267 = vmatmul.mubr.bf16.gmra.mrb[44].mxu0 %v3154_v22 }
 0x4b7   : > { %2318 = vmatprep.mubr.msk.bf16.mxu0 %vm2776_vm0, %v2775_v61 }
 0x571   : > { %v2256_v41 = vpop.f32.mrb[32].mxu0 }
 0x572   : > { %v1222_v42 = vpop.f32.mrb[33].mxu0 }
 0x573   : > { %v2257_v43 = vpop.f32.mrb[34].mxu0 }
 0x574   : > { %v1286_v44 = vpack.c.bf16 %v2257_v43, %v2256_v41  ;;  %v1225_v14 = vpop.f32.mrb[35].mxu0  ;;  %v2506_v41 = vld [vmem:[#allocation11 + $0x28] sm:$0xff]  }
 0x575   : > { %v1285_v45 = vpack.c.bf16 %v1225_v14, %v1222_v42 }
 0x577   : > { %2286 = vmatprep.mubr.bf16.mxu1 %v1285_v45 }
 0x578   : > { %2287 = vmatmul.mubr.bf16.vlgmr.msra.gmra.mrb[32].mxu1 %v1286_v44 }
 0x579   : > { %v2260_v15 = vpop.f32.mrb[36].mxu0  ;;  %2323 = vmatpush3.bf16.msra.mxu1 %v2493_v58 }
 0x57a   : > { %v1238_v18 = vpop.f32.mrb[37].mxu0  ;;  %2324 = vmatprep.subr.bf16.mxu1 %v2775_v61 }
 0x57b   : > { %v2261_v19 = vpop.f32.mrb[38].mxu0 }
 0x57c   : > { %v1288_v46 = vpack.c.bf16 %v2261_v19, %v2260_v15  ;;  %v1241_v20 = vpop.f32.mrb[39].mxu0  ;;  %v2507_v15 = vld [vmem:[#allocation11 + $0x30] sm:$0xff]   ;;  %v1963_v19 = vld [vmem:[%s3343_s30] ss:$0 sm:$0xff] }
 0x57d   : > { %v1287_v47 = vpack.c.bf16 %v1241_v20, %v1238_v18  ;;  %2325 = vmatpush3.bf16.msra.mxu1 %v2494_v62  ;;  %v2508_v18 = vld [vmem:[#allocation11 + $0x38] sm:$0xff]  }
 0x57e   : > { %2326 = vmatprep.subr.bf16.mxu1 %v2775_v61 }
 0x57f   : > { %2290 = vmatprep.mubr.bf16.mxu1 %v1287_v47 }
 0x580   : > { %2291 = vmatmul.mubr.bf16.gmra.mrb[36].mxu1 %v1288_v46 }
 0x581   : > { %v2264_v21 = vpop.f32.mrb[40].mxu0  ;;  %2327 = vmatpush3.bf16.msra.mxu1 %v2495_v63 }
 0x582   : > { %v1254_v22 = vpop.f32.mrb[41].mxu0  ;;  %2328 = vmatprep.subr.bf16.mxu1 %v2775_v61 }
 0x583   : > { %v2265_v48 = vpop.f32.mrb[42].mxu0 }
 0x584   : > { %v1290_v49 = vpack.c.bf16 %v2265_v48, %v2264_v21  ;;  %v1257_v50 = vpop.f32.mrb[43].mxu0 }
 0x585   : > { %v1289_v51 = vpack.c.bf16 %v1257_v50, %v1254_v22  ;;  %2329 = vmatpush3.bf16.msra.mxu1 %v2496_v59  ;;  %v1730_v50 = vand.u32 127, %v720_v55 }
 0x586   : > { %2330 = vmatprep.subr.bf16.mxu1 %v2775_v61 }
 0x587   : > { %2294 = vmatprep.mubr.bf16.mxu1 %v1289_v51  ;;  %v1972_v51 = vld [vmem:[%s3344_s6] ss:$0 sm:$0xff]  ;;  %vm1731_vm1 = vcmp.lt.s32.totalorder %v1730_v50, 6 }
 0x588   : > { %2295 = vmatmul.mubr.bf16.gmra.mrb[40].mxu1 %v1290_v49 }
 0x589   : > { %v2268_v52 = vpop.f32.mrb[44].mxu0  ;;  %2331 = vmatpush3.bf16.msra.mxu1 %v2497_v0 }
 0x58a   : > { %v1270_v53 = vpop.f32.mrb[45].mxu0  ;;  %2332 = vmatprep.subr.bf16.mxu1 %v2775_v61 }
 0x58b   : > { %v2269_v54 = vpop.f32.mrb[46].mxu0 }
 0x58c   : > { %v1292_v57 = vpack.c.bf16 %v2269_v54, %v2268_v52  ;;  %v1273_v60 = vpop.f32.mrb[47].mxu0 }
 0x58d   : > { %v1291_v56 = vpack.c.bf16 %v1273_v60, %v1270_v53  ;;  %2333 = vmatpush3.bf16.msra.mxu1 %v2498_v1 }
 0x58e   : > { %2334 = vmatprep.subr.bf16.mxu1 %v2775_v61 }
 0x58f   : > { %2298 = vmatprep.mubr.bf16.mxu1 %v1291_v56 }
 0x590   : > { %2299 = vmatmul.mubr.bf16.gmra.mrb[44].mxu1 %v1292_v57 }
 0x591   : > { %2338 = vmatprep.mubr.msk.bf16.mxu1 %vm2776_vm0, %v2775_v61  ;;  %2335 = vmatpush3.bf16.msra.mxu1 %v2499_v2 }
 0x592   : > { %2336 = vmatprep.subr.bf16.mxu1 %v2775_v61 }
 0x595   : > { %2337 = vmatpush3.bf16.msra.mxu1 %v2500_v35 }
 0x64b   : > { %v2288_v3 = vpop.f32.mrb[32].mxu1 }
 0x64c   : > { %v1392_v5 = vpop.f32.mrb[33].mxu1 }
 0x64d   : > { %v2289_v6 = vpop.f32.mrb[34].mxu1 }
 0x64e   : > { %v1456_v7 = vpack.c.bf16 %v2289_v6, %v2288_v3  ;;  %v1395_v8 = vpop.f32.mrb[35].mxu1 }
 0x64f   : > { %v1455_v9 = vpack.c.bf16 %v1395_v8, %v1392_v5 }
 0x651   : > { %2303 = vmatpush3.bf16.msra.mxu0 %v1455_v9 }
 0x652   : > { %2304 = vmatprep.subr.bf16.mxu0 %v2775_v61 }
 0x653   : > { %v2292_v10 = vpop.f32.mrb[36].mxu1 }
 0x654   : > { %v1408_v11 = vpop.f32.mrb[37].mxu1 }
 0x655   : > { %v2293_v12 = vpop.f32.mrb[38].mxu1  ;;  %2305 = vmatpush3.bf16.msra.mxu0 %v1456_v7 }
 0x656   : > { %v1458_v4 = vpack.c.bf16 %v2293_v12, %v2292_v10  ;;  %v1411_v13 = vpop.f32.mrb[39].mxu1  ;;  %2306 = vmatprep.subr.bf16.mxu0 %v2775_v61 }
 0x657   : > { %v1457_v16 = vpack.c.bf16 %v1411_v13, %v1408_v11 }
 0x659   : > { %2307 = vmatpush3.bf16.msra.mxu0 %v1457_v16 }
 0x65a   : > { %2308 = vmatprep.subr.bf16.mxu0 %v2775_v61 }
 0x65b   : > { %v2296_v17 = vpop.f32.mrb[40].mxu1 }
 0x65c   : > { %v1424_v23 = vpop.f32.mrb[41].mxu1 }
 0x65d   : > { %v2297_v24 = vpop.f32.mrb[42].mxu1  ;;  %2309 = vmatpush3.bf16.msra.mxu0 %v1458_v4 }
 0x65e   : > { %v1460_v25 = vpack.c.bf16 %v2297_v24, %v2296_v17  ;;  %v1427_v26 = vpop.f32.mrb[43].mxu1  ;;  %2310 = vmatprep.subr.bf16.mxu0 %v2775_v61 }
 0x65f   : > { %v1459_v27 = vpack.c.bf16 %v1427_v26, %v1424_v23 }
 0x661   : > { %2311 = vmatpush3.bf16.msra.mxu0 %v1459_v27 }
 0x662   : > { %2312 = vmatprep.subr.bf16.mxu0 %v2775_v61 }
 0x663   : > { %v2300_v28 = vpop.f32.mrb[44].mxu1 }
 0x664   : > { %v1440_v29 = vpop.f32.mrb[45].mxu1 }
 0x665   : > { %v2301_v30 = vpop.f32.mrb[46].mxu1  ;;  %2313 = vmatpush3.bf16.msra.mxu0 %v1460_v25 }
 0x666   : > { %v1462_v31 = vpack.c.bf16 %v2301_v30, %v2300_v28  ;;  %v1443_v32 = vpop.f32.mrb[47].mxu1  ;;  %2314 = vmatprep.subr.bf16.mxu0 %v2775_v61 }
 0x667   : > { %v1461_v33 = vpack.c.bf16 %v1443_v32, %v1440_v29 }
 0x669   : > { %2315 = vmatpush3.bf16.msra.mxu0 %v1461_v33 }
 0x66a   : > { %2316 = vmatprep.subr.bf16.mxu0 %v2775_v61 }
 0x66d   : > { %2317 = vmatpush3.bf16.msra.mxu0 %v1462_v31 }
 0x66e   : > { %2342 = vmatprep.subr.bf16.mxu0 %v2775_v61 }
 0x670   : > { %2319 = vmatmul.mubr.bf16.vlgmr.msra.gmra.mrb[48].mxu0 %v1463_v34 }
 0x671   : > { %2358 = vmatprep.mubr.msk.bf16.mxu0 %vm2776_vm0, %v2775_v61  ;;  %2343 = vmatpush3.bf16.msra.mxu0 %v2501_v36 }
 0x672   : > { %2344 = vmatprep.subr.bf16.mxu0 %v2775_v61 }
 0x675   : > { %2345 = vmatpush3.bf16.msra.mxu0 %v2502_v37 }
 0x676   : > { %2346 = vmatprep.subr.bf16.mxu0 %v2775_v61 }
 0x679   : > { %2347 = vmatpush3.bf16.msra.mxu0 %v2503_v38 }
 0x67a   : > { %2348 = vmatprep.subr.bf16.mxu0 %v2775_v61 }
 0x67d   : > { %2349 = vmatpush3.bf16.msra.mxu0 %v2504_v40 }
 0x67e   : > { %2350 = vmatprep.subr.bf16.mxu0 %v2775_v61 }
 0x681   : > { %2351 = vmatpush3.bf16.msra.mxu0 %v2505_v39 }
 0x682   : > { %2352 = vmatprep.subr.bf16.mxu0 %v2775_v61 }
 0x685   : > { %2353 = vmatpush3.bf16.msra.mxu0 %v2506_v41 }
 0x686   : > { %2354 = vmatprep.subr.bf16.mxu0 %v2775_v61 }
 0x689   : > { %2355 = vmatpush3.bf16.msra.mxu0 %v2507_v15 }
 0x68a   : > { %2356 = vmatprep.subr.bf16.mxu0 %v2775_v61 }
 0x68d   : > { %2357 = vmatpush3.bf16.msra.mxu0 %v2508_v18 }
 0x743   : > { %v1498_v42 = vpop.f32.mrb[48].mxu0 }
 0x744   : > { %v1504_v43 = vpack.c.bf16 %v1498_v42, %v1498_v42  ;;  %v2320_v44 = vpop.f32.mrb[49].mxu0 }
 0x745   : > { %v1501_v14 = vpop.f32.mrb[50].mxu0 }
 0x746   : > { %v2321_v45 = vpop.f32.mrb[51].mxu0  ;;  %2339 = vmatmul.mubr.bf16.vlgmr.msra.gmra.mrb[48].mxu1 %v1504_v43 }
 0x819   : > { %v1610_v46 = vpop.f32.mrb[48].mxu1 }
 0x81a   : > { %v1611_v20 = vadd.f32 %v1963_v19, %v1610_v46  ;;  %v2340_v47 = vpop.f32.mrb[49].mxu1 }
 0x81b   : > { %v1613_v21 = vpop.f32.mrb[50].mxu1 }
 0x81c   : > { %v1616_v22 = vmax.f32 %v1611_v20, 0.0  ;;  %v2341_v48 = vpop.f32.mrb[51].mxu1 }
 0x81e   : > { %v1617_v49 = vpack.c.bf16 %v1616_v22, %v1616_v22 }
 0x820   : > { %2359 = vmatmul.mubr.bf16.vlgmr.msra.gmra.mrb[52].mxu0 %v1617_v49 }
 0x8f3   : > { %v1723_v52 = vpop.f32.mrb[52].mxu0 }
 0x8f4   : > { %v1724_v53 = vadd.f32 %v1972_v51, %v1723_v52  ;;  %v2360_v54 = vpop.f32.mrb[53].mxu0 }
 0x8f5   : > { %v1726_v57 = vpop.f32.mrb[54].mxu0 }
 0x8f6   : > { %v2361_v60 = vpop.f32.mrb[55].mxu0  ;;  %v1732_v56 = vsel %vm1731_vm1, %v1724_v53, -1e+30 }
 0x8f7   : > { %1733 = vmax.xlane.f32.xlu0 %v1732_v56 }
 0x984   : > { %v1734_v61 = vpop.xlane.xlu0 %1733 }
 0x985   : > { %v1735_v58 = vsub.f32 %v1732_v56, %v1734_v61 }
 0x987   : > { %v1736_v62 = vmul.f32 1.442695, %v1735_v58 }
 0x989   : > { %2509 = vpow2.f32 %v1736_v62 }
 0x993   : > { %v2510_v55 = vpop.eup %2509 }
 0x994   : > { %v1738_v63 = vsel %vm1731_vm1, %v2510_v55, 0.0 }
 0x995   : > { %1739 = vadd.xlane.f32.xlu0 %v1738_v63 }
 0xa22   : > { %v1740_v59 = vpop.xlane.xlu0 %1739 }
 0xa23   : > { %2511 = vlog2.f32 %v1740_v59 }
 0xa2d   : > { %v2512_v0 = vpop.eup %2511 }
 0xa2e   : > { %v1742_v1 = vmul.f32 0.6931472, %v2512_v0 }
 0xa30   : > { %v1743_v2 = vsub.f32 %v1735_v58, %v1742_v1 }
 0xa32   : > { %1744 = vst [vmem:[%s468_s14] sm:$0xff] %v1743_v2 }
 0xa33   : > { %2700 = shalt.err (!%p2697_p5)
}
 0xa34   : > { %s2701_s18 = scalar_lea.hbm %s3228_s26, 128  ;;  %s2705_s29 = scalar_lea.hbm %s3346_s22, 512 }
 0xa35   : > { %p2702_p1 = scmp.ne.s32.totalorder %s3228_s26, %s2701_s18  ;;  %p2706_p11 = scmp.lt.u32.totalorder %s3228_s26, %s3346_s22 }
 0xa36   : > { %p2707_p13 = scmp.lt.u32.totalorder %s2705_s29, %s2701_s18  ;;  %p2709_p8 = scmp.lt.u32.totalorder %s2701_s18, %s3228_s26 }
 0xa37   : > { %p2703_p7 = pnand %p2702_p1, %p3347_p12 }
 0xa38   : > { %p2708_p3 = por %p2707_p13, %p2706_p11 }
 0xa39   : > { %p2704_p0 = pneg %p2703_p7 }
 0xa3a   : > { %p2710_p2 = por %p2709_p8, %p2708_p3 }
 0xa3c   : > { %p2711_p6 = pnand %p2710_p2, %p2704_p0 }
 0xa3e   : > { %2714 = shalt.err (!%p2711_p6)
}
 0xa3f   : > { %2380 = dma.vmem_to_hbm [thread:$0]  (%p3347_p12), %s3230_s8, 128, %s3228_s26, %s1746_s17  }
 0xa40 PF: > { %s3348_s30 = sld [smem:[#allocation19_spill]]  ;;  %s3349_s24 = sld [smem:[#allocation24_spill]] }
 0xa41   : > { %p2413_p9 = scmp.ge.s32.totalorder %s2765_s12, 2 }
 0xa46   : > { %s1771_s3 = sand.u32 1, %s3348_s30   ;;  %p3350_p10 = scmp.ne.s32.totalorder %s3349_s24, 0 }
 0xa47   : > { %s1772_s6 = scalar_lea.sflag [#allocation4], %s1771_s3 }
 0xa48   : > { %p2403_p4 = pnand %p2413_p9, %p3350_p10 }
 0xa4a   : > { %2748 = dma.done.wait (!%p2403_p4), %s1772_s6, 128  }
 0xa4b   : > { %2750 = vsyncadd (!%p2403_p4), %s1772_s6, 4294967168  ;;  %s3351_s12 = sld [smem:[#allocation21_spill]]  ;;  %s3352_s11 = sld [smem:[#allocation20_spill]] }
 0xa4c   : > { %s3353_s27 = sld [smem:[#allocation22_spill]]  ;;  %s3354_s30 = smov %s2757_s10 }
 0xa51   : > { %p27_p5 = scmp.ge.s32.totalorder %s3351_s12, 6   ;;  %s3355_s10 = smov %s3352_s11 }
 0xa52   : > { %s3356_s11 = smov %s3353_s27 }
 0xa53   :  { %29 = sbr.rel (!%p27_p5) target bundleno = 15 (0xf), region = 139 }
 0xa5a   :  { %1777 = vsyncpa [#allocation3], 1 }
 0xa5b   :  { %1779 = vsyncpa [#allocation3 + $0x1], 1 }
 0xa5c   :  { %1780 = vsyncpa [#allocation6], 1 }
 0xa5d   :  { %1782 = vsyncpa [#allocation6 + $0x1], 1 }
 0xa5e   :  { %1783 = vsyncpa [#allocation9], 1 }
 0xa5f   :  { %1784 = vsyncpa [#allocation12], 1 }
 0xa60   :  { %1785 = vsyncpa [#allocation4], 1 }
 0xa61   :  { %1787 = vsyncpa [#allocation4 + $0x1], 1 }

</bundles_post_ra>
